<compile_context>
chip_gen: v5e
topology: v5e:2x2
jax: 0.10.0
libtpu: 0.0.40
codegen_flags: <defaults>
</compile_context>

<pallas_src>
import jax
import jax.numpy as jnp
from jax.experimental import pallas as pl
from jax.experimental.pallas import tpu as pltpu


# ---------------------------------------------------------------------------
# Kernel A: conv1 (1->10, k5) + bias + 2x2 maxpool + ReLU, all on the MXU.
#   s1_ref : [36, Mb]     shifted input planes, row = a*6 + c, lane = (b, i, j)
#   w1q_ref: [4, 10, 36]  zero-expanded per-pooling-quadrant conv1 weights
#   b1_ref : [10, 1]
#   o_ref  : [10, Mb]     relu(maxpool(conv1(x) + b)) on the 12x12 pooled grid
# ---------------------------------------------------------------------------
def _conv1_pool_relu_kernel(s1_ref, w1q_ref, b1_ref, o_ref):
    s1 = s1_ref[...]
    pooled = None
    for q in range(4):                       # static unroll: 4 pooling parities
        acc = jnp.dot(w1q_ref[q], s1, preferred_element_type=jnp.float32)
        pooled = acc if pooled is None else jnp.maximum(pooled, acc)
    o_ref[...] = jnp.maximum(pooled + b1_ref[...], 0.0)


# ---------------------------------------------------------------------------
# Kernel B: conv2 (10->20, k5) + bias + 2x2 maxpool + ReLU, all on the MXU.
#   s2_ref : [360, Mb]    shifted conv1-activation planes, row = (a*6+c)*10+ci
#   w2q_ref: [4, 20, 360] zero-expanded per-quadrant conv2 weights
#   b2_ref : [20, 1]
#   o_ref  : [20, Mb]     relu(maxpool(conv2(a1) + b)) on the 4x4 pooled grid
# ---------------------------------------------------------------------------
def _conv2_pool_relu_kernel(s2_ref, w2q_ref, b2_ref, o_ref):
    s2 = s2_ref[...]
    pooled = None
    for q in range(4):
        acc = jnp.dot(w2q_ref[q], s2, preferred_element_type=jnp.float32)
        pooled = acc if pooled is None else jnp.maximum(pooled, acc)
    o_ref[...] = jnp.maximum(pooled + b2_ref[...], 0.0)


# ---------------------------------------------------------------------------
# Kernel C: fc1 + ReLU + fc2, one K=320 matmul + one K=50 matmul per tile.
#   a_ref: [TB, 320]; w1_ref: [320, 50]; b1_ref: [1, 50]
#   w2_ref: [50, Lp]; b2_ref: [1, Lp];   o_ref: [TB, Lp]   (Lp = 128-padded)
# ---------------------------------------------------------------------------
def _fc_kernel(a_ref, w1_ref, b1_ref, w2_ref, b2_ref, o_ref):
    h = jnp.dot(a_ref[...], w1_ref[...], preferred_element_type=jnp.float32)
    h = jnp.maximum(h + b1_ref[...], 0.0)
    o_ref[...] = (jnp.dot(h, w2_ref[...], preferred_element_type=jnp.float32)
                  + b2_ref[...])


# ---------------------------------------------------------------------------
# Batch-tile picker: largest multiple-of-8 divisor of B up to max_tb, preferring
# >= 2 grid steps (so the "parallel" axis can shard across v7x's two TCs).
# ---------------------------------------------------------------------------
def _pick_tb(batch, max_tb):
    if batch % 8 != 0:
        return batch                      # ragged batch: single grid step
    hi = min(max_tb, batch)
    hi -= hi % 8
    for tb in range(hi, 7, -8):
        if batch % tb == 0 and batch // tb >= 2:
            return tb
    return batch


# ---------------------------------------------------------------------------
# pallas_call wrappers (batch-tiled grid, "parallel" semantics, cost hints)
# ---------------------------------------------------------------------------
def _conv1_stage(s1, w1q, b1, batch, tb):
    grid = batch // tb
    mb, m = tb * 144, batch * 144
    cost = pl.CostEstimate(flops=int(2 * 4 * 10 * 36 * m), transcendentals=0,
                           bytes_accessed=int(4 * (36 * m + 10 * m + 1450)))
    return pl.pallas_call(
        _conv1_pool_relu_kernel,
        out_shape=jax.ShapeDtypeStruct((10, m), jnp.float32),
        grid=(grid,),
        in_specs=[
            pl.BlockSpec((36, mb), lambda i: (0, i)),
            pl.BlockSpec((4, 10, 36), lambda i: (0, 0, 0)),
            pl.BlockSpec((10, 1), lambda i: (0, 0)),
        ],
        out_specs=pl.BlockSpec((10, mb), lambda i: (0, i)),
        compiler_params=pltpu.CompilerParams(
            dimension_semantics=("parallel",),
            vmem_limit_bytes=32 * 1024 * 1024),
        cost_estimate=cost,
    )(s1, w1q, b1)


def _conv2_stage(s2, w2q, b2, batch, tb):
    grid = batch // tb
    mb, m = tb * 16, batch * 16
    cost = pl.CostEstimate(flops=int(2 * 4 * 20 * 360 * m), transcendentals=0,
                           bytes_accessed=int(4 * (360 * m + 20 * m + 28820)))
    return pl.pallas_call(
        _conv2_pool_relu_kernel,
        out_shape=jax.ShapeDtypeStruct((20, m), jnp.float32),
        grid=(grid,),
        in_specs=[
            pl.BlockSpec((360, mb), lambda i: (0, i)),
            pl.BlockSpec((4, 20, 360), lambda i: (0, 0, 0)),
            pl.BlockSpec((20, 1), lambda i: (0, 0)),
        ],
        out_specs=pl.BlockSpec((20, mb), lambda i: (0, i)),
        compiler_params=pltpu.CompilerParams(
            dimension_semantics=("parallel",),
            vmem_limit_bytes=32 * 1024 * 1024),
        cost_estimate=cost,
    )(s2, w2q, b2)


def _fc_stage(a2_flat, wf1, bf1, wf2, bf2, batch, tb, lat_pad):
    grid = batch // tb
    cost = pl.CostEstimate(
        flops=int(2 * batch * (320 * 50 + 50 * lat_pad)), transcendentals=0,
        bytes_accessed=int(4 * (batch * 320 + 320 * 50 + 50 * lat_pad
                                + batch * lat_pad + 50 + lat_pad)))
    return pl.pallas_call(
        _fc_kernel,
        out_shape=jax.ShapeDtypeStruct((batch, lat_pad), jnp.float32),
        grid=(grid,),
        in_specs=[
            pl.BlockSpec((tb, 320), lambda i: (i, 0)),
            pl.BlockSpec((320, 50), lambda i: (0, 0)),
            pl.BlockSpec((1, 50), lambda i: (0, 0)),
            pl.BlockSpec((50, lat_pad), lambda i: (0, 0)),
            pl.BlockSpec((1, lat_pad), lambda i: (0, 0)),
        ],
        out_specs=pl.BlockSpec((tb, lat_pad), lambda i: (i, 0)),
        compiler_params=pltpu.CompilerParams(dimension_semantics=("parallel",)),
        cost_estimate=cost,
    )(a2_flat, wf1, bf1, wf2, bf2)


# ---------------------------------------------------------------------------
# MNIST_Net forward (dropout=False / eval path)
# ---------------------------------------------------------------------------
def mnist_net_forward(x, params, conv1_tb=128, conv2_tb=256, fc_tb=512):
    (c1w, c1b, c2w, c2b, f1w, f1b, f2w, f2b) = params
    batch = x.shape[0]
    assert x.shape[1:] == (1, 28, 28), "MNIST_Net expects 1x28x28 inputs"
    latent = f2w.shape[0]
    x2 = x[:, 0].astype(jnp.float32)                               # [B, 28, 28]

    # ---- Stage 1: conv1 + pool + relu -------------------------------------
    # Shifted planes: s1[a*6+c, b*144 + i*12 + j] = x[b, 2i+a, 2j+c].
    s1 = jnp.stack(
        [x2[:, a:a + 24:2, c:c + 24:2] for a in range(6) for c in range(6)],
        axis=0).reshape(36, batch * 144)
    # Zero-expanded per-quadrant conv1 weights: w1q[qy*2+qx, o, a*6+c].
    w1 = c1w.reshape(10, 5, 5).astype(jnp.float32)
    w1q = jnp.zeros((4, 10, 6, 6), jnp.float32)
    for qy in range(2):
        for qx in range(2):
            w1q = w1q.at[qy * 2 + qx, :, qy:qy + 5, qx:qx + 5].set(w1)
    w1q = w1q.reshape(4, 10, 36)
    tb1 = _pick_tb(batch, conv1_tb)
    a1 = _conv1_stage(s1, w1q, c1b.reshape(10, 1).astype(jnp.float32),
                      batch, tb1)                                  # [10, B*144]

    # ---- Stage 2: conv2 + pool + relu -------------------------------------
    a1_4d = a1.reshape(10, batch, 12, 12)
    # Shifted planes: s2[(a*6+c)*10 + ci, b*16 + i*4 + j] = a1[ci, b, 2i+a, 2j+c].
    s2 = jnp.stack(
        [a1_4d[:, :, a:a + 8:2, c:c + 8:2] for a in range(6) for c in range(6)],
        axis=0).reshape(360, batch * 16)
    # Zero-expanded per-quadrant conv2 weights: w2q[q, o, (a*6+c)*10 + ci].
    w2t = c2w.transpose(0, 2, 3, 1).astype(jnp.float32)            # [20,5,5,10]
    w2q = jnp.zeros((4, 20, 6, 6, 10), jnp.float32)
    for qy in range(2):
        for qx in range(2):
            w2q = w2q.at[qy * 2 + qx, :, qy:qy + 5, qx:qx + 5, :].set(w2t)
    w2q = w2q.reshape(4, 20, 360)
    tb2 = _pick_tb(batch, conv2_tb)
    a2 = _conv2_stage(s2, w2q, c2b.reshape(20, 1).astype(jnp.float32),
                      batch, tb2)                                  # [20, B*16]

    # ---- Stage 3: fc1 + relu + fc2 -----------------------------------------
    # PyTorch flatten order (c, h, w): a2_flat[b, c*16 + s] = a2[c, b*16 + s].
    a2_flat = a2.reshape(20, batch, 16).transpose(1, 0, 2).reshape(batch, 320)
    lat_pad = ((latent + 127) // 128) * 128        # lane-dense fc2 output store
    wf2 = jnp.zeros((50, lat_pad), jnp.float32).at[:, :latent].set(
        f2w.T.astype(jnp.float32))
    bf2 = jnp.zeros((1, lat_pad), jnp.float32).at[0, :latent].set(
        f2b.astype(jnp.float32))
    tb3 = _pick_tb(batch, fc_tb)
    out = _fc_stage(a2_flat, f1w.T.astype(jnp.float32),
                    f1b.reshape(1, 50).astype(jnp.float32), wf2, bf2,
                    batch, tb3, lat_pad)
    return out[:, :latent]                                         # [B, latent]


# ---------------------------------------------------------------------------
# Deterministic parameter init (PyTorch-default-style uniform bounds)
# ---------------------------------------------------------------------------
def init_params(key, latent_dim):
    ks = jax.random.split(key, 8)

    def u(k, shape, fan_in):
        bound = 1.0 / (fan_in ** 0.5)
        return jax.random.uniform(k, shape, jnp.float32, -bound, bound)

    c1w = u(ks[0], (10, 1, 5, 5), 25)
    c1b = u(ks[1], (10,), 25)
    c2w = u(ks[2], (20, 10, 5, 5), 250)
    c2b = u(ks[3], (20,), 250)
    f1w = u(ks[4], (50, 320), 320)
    f1b = u(ks[5], (50,), 320)
    f2w = u(ks[6], (latent_dim, 50), 50)
    f2b = u(ks[7], (latent_dim,), 50)
    return (c1w, c1b, c2w, c2b, f1w, f1b, f2w, f2b)


# ---------------------------------------------------------------------------
# Pure-JAX reference (f32-accurate) for the correctness check
# ---------------------------------------------------------------------------
def reference_forward(x, params):
    (c1w, c1b, c2w, c2b, f1w, f1b, f2w, f2b) = params
    hi = jax.lax.Precision.HIGHEST

    def conv(z, w, b):
        y = jax.lax.conv(z, w, (1, 1), "VALID", precision=hi)   # NCHW / OIHW
        return y + b.reshape(1, -1, 1, 1)

    def pool_relu(y):
        y = jax.lax.reduce_window(y, -jnp.inf, jax.lax.max,
                                  (1, 1, 2, 2), (1, 1, 2, 2), "VALID")
        return jnp.maximum(y, 0.0)

    batch = x.shape[0]
    y = pool_relu(conv(x, c1w, c1b))
    y = pool_relu(conv(y, c2w, c2b))
    y = y.reshape(batch, 320)
    y = jnp.maximum(jnp.dot(y, f1w.T, precision=hi) + f1b, 0.0)
    return jnp.dot(y, f2w.T, precision=hi) + f2b


if __name__ == "__main__":
    key = jax.random.PRNGKey(0)
    kx, kp = jax.random.split(key)

    latent_dim = 10
    batch = 16            # small test batch -> 2 grid steps of 8 per stage
    x = jax.random.normal(kx, (batch, 1, 28, 28), dtype=jnp.float32)
    params = init_params(kp, latent_dim)

    fwd = jax.jit(mnist_net_forward)
    out = jax.block_until_ready(fwd(x, params))
    assert out.shape == (batch, latent_dim)

    ref = jax.block_until_ready(reference_forward(x, params))
    assert jnp.allclose(out, ref, rtol=1e-4, atol=1e-4), "mismatch vs JAX reference"

    print("KERNEL_OK")
</pallas_src>

<mosaic_0001>
module attributes {stable_mosaic.version = 11 : i64} {
  func.func @_conv1_pool_relu_kernel(%arg0: i32, %arg1: memref<36x1152xf32, #tpu.memory_space<vmem>>, %arg2: memref<4x10x36xf32, #tpu.memory_space<vmem>>, %arg3: memref<10x1xf32, #tpu.memory_space<vmem>>, %arg4: memref<10x1152xf32, #tpu.memory_space<vmem>>) attributes {dimension_semantics = [#tpu.dimension_semantics<parallel>], iteration_bounds = array<i64: 2>, scalar_prefetch = 0 : i64, scratch_operands = 0 : i64, tpu.core_type = #tpu.core_type<tc>, window_params = [{transform_indices = @transform_0, window_bounds = array<i64: 36, 1152>}, {pipeline_mode = #tpu.pipeline_mode<synchronous>, transform_indices = @transform_1, window_bounds = array<i64: 4, 10, 36>}, {pipeline_mode = #tpu.pipeline_mode<synchronous>, transform_indices = @transform_2, window_bounds = array<i64: 10, 1>}, {transform_indices = @transform_3, window_bounds = array<i64: 10, 1152>}]} {
    %c0 = arith.constant 0 : index
    %c0_0 = arith.constant 0 : index
    %0 = vector.load %arg1[%c0, %c0_0] : memref<36x1152xf32, #tpu.memory_space<vmem>>, vector<36x1152xf32>
    %c0_1 = arith.constant 0 : index
    %c0_2 = arith.constant 0 : index
    %c0_3 = arith.constant 0 : index
    %1 = vector.load %arg2[%c0_1, %c0_2, %c0_3] : memref<4x10x36xf32, #tpu.memory_space<vmem>>, vector<1x10x36xf32>
    %2 = vector.shape_cast %1 : vector<1x10x36xf32> to vector<10x36xf32>
    %cst = arith.constant dense<0.000000e+00> : vector<10x1152xf32>
    %3 = tpu.matmul %2, %0, %cst {dimension_numbers = #tpu.dot_dimension_numbers<[1], [0], [0], [1], [0, 0, 1, 1], [], []>} : vector<10x36xf32>, vector<36x1152xf32>, vector<10x1152xf32> -> vector<10x1152xf32>
    %c1 = arith.constant 1 : index
    %c0_4 = arith.constant 0 : index
    %c0_5 = arith.constant 0 : index
    %4 = vector.load %arg2[%c1, %c0_4, %c0_5] : memref<4x10x36xf32, #tpu.memory_space<vmem>>, vector<1x10x36xf32>
    %5 = vector.shape_cast %4 : vector<1x10x36xf32> to vector<10x36xf32>
    %cst_6 = arith.constant dense<0.000000e+00> : vector<10x1152xf32>
    %6 = tpu.matmul %5, %0, %cst_6 {dimension_numbers = #tpu.dot_dimension_numbers<[1], [0], [0], [1], [0, 0, 1, 1], [], []>} : vector<10x36xf32>, vector<36x1152xf32>, vector<10x1152xf32> -> vector<10x1152xf32>
    %7 = arith.maximumf %3, %6 : vector<10x1152xf32>
    %c2 = arith.constant 2 : index
    %c0_7 = arith.constant 0 : index
    %c0_8 = arith.constant 0 : index
    %8 = vector.load %arg2[%c2, %c0_7, %c0_8] : memref<4x10x36xf32, #tpu.memory_space<vmem>>, vector<1x10x36xf32>
    %9 = vector.shape_cast %8 : vector<1x10x36xf32> to vector<10x36xf32>
    %cst_9 = arith.constant dense<0.000000e+00> : vector<10x1152xf32>
    %10 = tpu.matmul %9, %0, %cst_9 {dimension_numbers = #tpu.dot_dimension_numbers<[1], [0], [0], [1], [0, 0, 1, 1], [], []>} : vector<10x36xf32>, vector<36x1152xf32>, vector<10x1152xf32> -> vector<10x1152xf32>
    %11 = arith.maximumf %7, %10 : vector<10x1152xf32>
    %c3 = arith.constant 3 : index
    %c0_10 = arith.constant 0 : index
    %c0_11 = arith.constant 0 : index
    %12 = vector.load %arg2[%c3, %c0_10, %c0_11] : memref<4x10x36xf32, #tpu.memory_space<vmem>>, vector<1x10x36xf32>
    %13 = vector.shape_cast %12 : vector<1x10x36xf32> to vector<10x36xf32>
    %cst_12 = arith.constant dense<0.000000e+00> : vector<10x1152xf32>
    %14 = tpu.matmul %13, %0, %cst_12 {dimension_numbers = #tpu.dot_dimension_numbers<[1], [0], [0], [1], [0, 0, 1, 1], [], []>} : vector<10x36xf32>, vector<36x1152xf32>, vector<10x1152xf32> -> vector<10x1152xf32>
    %15 = arith.maximumf %11, %14 : vector<10x1152xf32>
    %c0_13 = arith.constant 0 : index
    %c0_14 = arith.constant 0 : index
    %16 = vector.load %arg3[%c0_13, %c0_14] : memref<10x1xf32, #tpu.memory_space<vmem>>, vector<10x1xf32>
    %17 = vector.broadcast %16 : vector<10x1xf32> to vector<10x1152xf32>
    %18 = arith.addf %15, %17 : vector<10x1152xf32>
    %cst_15 = arith.constant 0.000000e+00 : f32
    %19 = vector.broadcast %cst_15 : f32 to vector<10x1152xf32>
    %20 = arith.maximumf %18, %19 : vector<10x1152xf32>
    %c0_16 = arith.constant 0 : index
    %c0_17 = arith.constant 0 : index
    %21 = vector.load %arg4[%c0_16, %c0_17] : memref<10x1152xf32, #tpu.memory_space<vmem>>, vector<10x1152xf32>
    tpu.vector_store %arg4[%c0_16, %c0_17], %20 {strides = array<i32>} : memref<10x1152xf32, #tpu.memory_space<vmem>>, vector<10x1152xf32>,
    return
  }
  func.func @transform_0(%arg0: i32) -> (i32, i32) {
    %c0_i32 = arith.constant 0 : i32
    %c0_i32_0 = arith.constant 0 : i32
    return %c0_i32, %arg0 : i32, i32
  }
  func.func @transform_1(%arg0: i32) -> (i32, i32, i32) {
    %c0_i32 = arith.constant 0 : i32
    %c0_i32_0 = arith.constant 0 : i32
    %c0_i32_1 = arith.constant 0 : i32
    %c0_i32_2 = arith.constant 0 : i32
    return %c0_i32, %c0_i32_0, %c0_i32_1 : i32, i32, i32
  }
  func.func @transform_2(%arg0: i32) -> (i32, i32) {
    %c0_i32 = arith.constant 0 : i32
    %c0_i32_0 = arith.constant 0 : i32
    %c0_i32_1 = arith.constant 0 : i32
    return %c0_i32, %c0_i32_0 : i32, i32
  }
  func.func @transform_3(%arg0: i32) -> (i32, i32) {
    %c0_i32 = arith.constant 0 : i32
    %c0_i32_0 = arith.constant 0 : i32
    return %c0_i32, %arg0 : i32, i32
  }
}

module attributes {stable_mosaic.version = 11 : i64} {
  func.func @_conv2_pool_relu_kernel(%arg0: i32, %arg1: memref<360x128xf32, #tpu.memory_space<vmem>>, %arg2: memref<4x20x360xf32, #tpu.memory_space<vmem>>, %arg3: memref<20x1xf32, #tpu.memory_space<vmem>>, %arg4: memref<20x128xf32, #tpu.memory_space<vmem>>) attributes {dimension_semantics = [#tpu.dimension_semantics<parallel>], iteration_bounds = array<i64: 2>, scalar_prefetch = 0 : i64, scratch_operands = 0 : i64, tpu.core_type = #tpu.core_type<tc>, window_params = [{transform_indices = @transform_0, window_bounds = array<i64: 360, 128>}, {pipeline_mode = #tpu.pipeline_mode<synchronous>, transform_indices = @transform_1, window_bounds = array<i64: 4, 20, 360>}, {pipeline_mode = #tpu.pipeline_mode<synchronous>, transform_indices = @transform_2, window_bounds = array<i64: 20, 1>}, {transform_indices = @transform_3, window_bounds = array<i64: 20, 128>}]} {
    %c0 = arith.constant 0 : index
    %c0_0 = arith.constant 0 : index
    %0 = vector.load %arg1[%c0, %c0_0] : memref<360x128xf32, #tpu.memory_space<vmem>>, vector<360x128xf32>
    %c0_1 = arith.constant 0 : index
    %c0_2 = arith.constant 0 : index
    %c0_3 = arith.constant 0 : index
    %1 = vector.load %arg2[%c0_1, %c0_2, %c0_3] : memref<4x20x360xf32, #tpu.memory_space<vmem>>, vector<1x20x360xf32>
    %2 = vector.shape_cast %1 : vector<1x20x360xf32> to vector<20x360xf32>
    %cst = arith.constant dense<0.000000e+00> : vector<20x128xf32>
    %3 = tpu.matmul %2, %0, %cst {dimension_numbers = #tpu.dot_dimension_numbers<[1], [0], [0], [1], [0, 0, 1, 1], [], []>} : vector<20x360xf32>, vector<360x128xf32>, vector<20x128xf32> -> vector<20x128xf32>
    %c1 = arith.constant 1 : index
    %c0_4 = arith.constant 0 : index
    %c0_5 = arith.constant 0 : index
    %4 = vector.load %arg2[%c1, %c0_4, %c0_5] : memref<4x20x360xf32, #tpu.memory_space<vmem>>, vector<1x20x360xf32>
    %5 = vector.shape_cast %4 : vector<1x20x360xf32> to vector<20x360xf32>
    %cst_6 = arith.constant dense<0.000000e+00> : vector<20x128xf32>
    %6 = tpu.matmul %5, %0, %cst_6 {dimension_numbers = #tpu.dot_dimension_numbers<[1], [0], [0], [1], [0, 0, 1, 1], [], []>} : vector<20x360xf32>, vector<360x128xf32>, vector<20x128xf32> -> vector<20x128xf32>
    %7 = arith.maximumf %3, %6 : vector<20x128xf32>
    %c2 = arith.constant 2 : index
    %c0_7 = arith.constant 0 : index
    %c0_8 = arith.constant 0 : index
    %8 = vector.load %arg2[%c2, %c0_7, %c0_8] : memref<4x20x360xf32, #tpu.memory_space<vmem>>, vector<1x20x360xf32>
    %9 = vector.shape_cast %8 : vector<1x20x360xf32> to vector<20x360xf32>
    %cst_9 = arith.constant dense<0.000000e+00> : vector<20x128xf32>
    %10 = tpu.matmul %9, %0, %cst_9 {dimension_numbers = #tpu.dot_dimension_numbers<[1], [0], [0], [1], [0, 0, 1, 1], [], []>} : vector<20x360xf32>, vector<360x128xf32>, vector<20x128xf32> -> vector<20x128xf32>
    %11 = arith.maximumf %7, %10 : vector<20x128xf32>
    %c3 = arith.constant 3 : index
    %c0_10 = arith.constant 0 : index
    %c0_11 = arith.constant 0 : index
    %12 = vector.load %arg2[%c3, %c0_10, %c0_11] : memref<4x20x360xf32, #tpu.memory_space<vmem>>, vector<1x20x360xf32>
    %13 = vector.shape_cast %12 : vector<1x20x360xf32> to vector<20x360xf32>
    %cst_12 = arith.constant dense<0.000000e+00> : vector<20x128xf32>
    %14 = tpu.matmul %13, %0, %cst_12 {dimension_numbers = #tpu.dot_dimension_numbers<[1], [0], [0], [1], [0, 0, 1, 1], [], []>} : vector<20x360xf32>, vector<360x128xf32>, vector<20x128xf32> -> vector<20x128xf32>
    %15 = arith.maximumf %11, %14 : vector<20x128xf32>
    %c0_13 = arith.constant 0 : index
    %c0_14 = arith.constant 0 : index
    %16 = vector.load %arg3[%c0_13, %c0_14] : memref<20x1xf32, #tpu.memory_space<vmem>>, vector<20x1xf32>
    %17 = vector.broadcast %16 : vector<20x1xf32> to vector<20x128xf32>
    %18 = arith.addf %15, %17 : vector<20x128xf32>
    %cst_15 = arith.constant 0.000000e+00 : f32
    %19 = vector.broadcast %cst_15 : f32 to vector<20x128xf32>
    %20 = arith.maximumf %18, %19 : vector<20x128xf32>
    %c0_16 = arith.constant 0 : index
    %c0_17 = arith.constant 0 : index
    %21 = vector.load %arg4[%c0_16, %c0_17] : memref<20x128xf32, #tpu.memory_space<vmem>>, vector<20x128xf32>
    tpu.vector_store %arg4[%c0_16, %c0_17], %20 {strides = array<i32>} : memref<20x128xf32, #tpu.memory_space<vmem>>, vector<20x128xf32>,
    return
  }
  func.func @transform_0(%arg0: i32) -> (i32, i32) {
    %c0_i32 = arith.constant 0 : i32
    %c0_i32_0 = arith.constant 0 : i32
    return %c0_i32, %arg0 : i32, i32
  }
  func.func @transform_1(%arg0: i32) -> (i32, i32, i32) {
    %c0_i32 = arith.constant 0 : i32
    %c0_i32_0 = arith.constant 0 : i32
    %c0_i32_1 = arith.constant 0 : i32
    %c0_i32_2 = arith.constant 0 : i32
    return %c0_i32, %c0_i32_0, %c0_i32_1 : i32, i32, i32
  }
  func.func @transform_2(%arg0: i32) -> (i32, i32) {
    %c0_i32 = arith.constant 0 : i32
    %c0_i32_0 = arith.constant 0 : i32
    %c0_i32_1 = arith.constant 0 : i32
    return %c0_i32, %c0_i32_0 : i32, i32
  }
  func.func @transform_3(%arg0: i32) -> (i32, i32) {
    %c0_i32 = arith.constant 0 : i32
    %c0_i32_0 = arith.constant 0 : i32
    return %c0_i32, %arg0 : i32, i32
  }
}

module attributes {stable_mosaic.version = 11 : i64} {
  func.func @_fc_kernel(%arg0: i32, %arg1: memref<8x320xf32, #tpu.memory_space<vmem>>, %arg2: memref<320x50xf32, #tpu.memory_space<vmem>>, %arg3: memref<1x50xf32, #tpu.memory_space<vmem>>, %arg4: memref<50x128xf32, #tpu.memory_space<vmem>>, %arg5: memref<1x128xf32, #tpu.memory_space<vmem>>, %arg6: memref<8x128xf32, #tpu.memory_space<vmem>>) attributes {dimension_semantics = [#tpu.dimension_semantics<parallel>], iteration_bounds = array<i64: 2>, scalar_prefetch = 0 : i64, scratch_operands = 0 : i64, tpu.core_type = #tpu.core_type<tc>, window_params = [{transform_indices = @transform_0, window_bounds = array<i64: 8, 320>}, {pipeline_mode = #tpu.pipeline_mode<synchronous>, transform_indices = @transform_1, window_bounds = array<i64: 320, 50>}, {pipeline_mode = #tpu.pipeline_mode<synchronous>, transform_indices = @transform_2, window_bounds = array<i64: 1, 50>}, {pipeline_mode = #tpu.pipeline_mode<synchronous>, transform_indices = @transform_3, window_bounds = array<i64: 50, 128>}, {pipeline_mode = #tpu.pipeline_mode<synchronous>, transform_indices = @transform_4, window_bounds = array<i64: 1, 128>}, {transform_indices = @transform_5, window_bounds = array<i64: 8, 128>}]} {
    %c0 = arith.constant 0 : index
    %c0_0 = arith.constant 0 : index
    %0 = vector.load %arg1[%c0, %c0_0] : memref<8x320xf32, #tpu.memory_space<vmem>>, vector<8x320xf32>
    %c0_1 = arith.constant 0 : index
    %c0_2 = arith.constant 0 : index
    %1 = vector.load %arg2[%c0_1, %c0_2] : memref<320x50xf32, #tpu.memory_space<vmem>>, vector<320x50xf32>
    %cst = arith.constant dense<0.000000e+00> : vector<8x50xf32>
    %2 = tpu.matmul %0, %1, %cst {dimension_numbers = #tpu.dot_dimension_numbers<[1], [0], [0], [1], [0, 0, 1, 1], [], []>} : vector<8x320xf32>, vector<320x50xf32>, vector<8x50xf32> -> vector<8x50xf32>
    %c0_3 = arith.constant 0 : index
    %c0_4 = arith.constant 0 : index
    %3 = vector.load %arg3[%c0_3, %c0_4] : memref<1x50xf32, #tpu.memory_space<vmem>>, vector<1x50xf32>
    %4 = vector.broadcast %3 : vector<1x50xf32> to vector<8x50xf32>
    %5 = arith.addf %2, %4 : vector<8x50xf32>
    %cst_5 = arith.constant 0.000000e+00 : f32
    %6 = vector.broadcast %cst_5 : f32 to vector<8x50xf32>
    %7 = arith.maximumf %5, %6 : vector<8x50xf32>
    %c0_6 = arith.constant 0 : index
    %c0_7 = arith.constant 0 : index
    %8 = vector.load %arg4[%c0_6, %c0_7] : memref<50x128xf32, #tpu.memory_space<vmem>>, vector<50x128xf32>
    %cst_8 = arith.constant dense<0.000000e+00> : vector<8x128xf32>
    %9 = tpu.matmul %7, %8, %cst_8 {dimension_numbers = #tpu.dot_dimension_numbers<[1], [0], [0], [1], [0, 0, 1, 1], [], []>} : vector<8x50xf32>, vector<50x128xf32>, vector<8x128xf32> -> vector<8x128xf32>
    %c0_9 = arith.constant 0 : index
    %c0_10 = arith.constant 0 : index
    %10 = vector.load %arg5[%c0_9, %c0_10] : memref<1x128xf32, #tpu.memory_space<vmem>>, vector<1x128xf32>
    %11 = vector.broadcast %10 : vector<1x128xf32> to vector<8x128xf32>
    %12 = arith.addf %9, %11 : vector<8x128xf32>
    %c0_11 = arith.constant 0 : index
    %c0_12 = arith.constant 0 : index
    %13 = vector.load %arg6[%c0_11, %c0_12] : memref<8x128xf32, #tpu.memory_space<vmem>>, vector<8x128xf32>
    tpu.vector_store %arg6[%c0_11, %c0_12], %12 {strides = array<i32>} : memref<8x128xf32, #tpu.memory_space<vmem>>, vector<8x128xf32>,
    return
  }
  func.func @transform_0(%arg0: i32) -> (i32, i32) {
    %c0_i32 = arith.constant 0 : i32
    %c0_i32_0 = arith.constant 0 : i32
    return %arg0, %c0_i32 : i32, i32
  }
  func.func @transform_1(%arg0: i32) -> (i32, i32) {
    %c0_i32 = arith.constant 0 : i32
    %c0_i32_0 = arith.constant 0 : i32
    %c0_i32_1 = arith.constant 0 : i32
    return %c0_i32, %c0_i32_0 : i32, i32
  }
  func.func @transform_2(%arg0: i32) -> (i32, i32) {
    %c0_i32 = arith.constant 0 : i32
    %c0_i32_0 = arith.constant 0 : i32
    %c0_i32_1 = arith.constant 0 : i32
    return %c0_i32, %c0_i32_0 : i32, i32
  }
  func.func @transform_3(%arg0: i32) -> (i32, i32) {
    %c0_i32 = arith.constant 0 : i32
    %c0_i32_0 = arith.constant 0 : i32
    %c0_i32_1 = arith.constant 0 : i32
    return %c0_i32, %c0_i32_0 : i32, i32
  }
  func.func @transform_4(%arg0: i32) -> (i32, i32) {
    %c0_i32 = arith.constant 0 : i32
    %c0_i32_0 = arith.constant 0 : i32
    %c0_i32_1 = arith.constant 0 : i32
    return %c0_i32, %c0_i32_0 : i32, i32
  }
  func.func @transform_5(%arg0: i32) -> (i32, i32) {
    %c0_i32 = arith.constant 0 : i32
    %c0_i32_0 = arith.constant 0 : i32
    return %arg0, %c0_i32 : i32, i32
  }
}

</mosaic_0001>

<bundles_post_ra>
// kernel: mnist_net_forward.3
= control target key start
LH: loop header
LB: loop body
LE: loop exit
PB: predicated region body
PF: predicated region fallthrough
CT: control target
= control target key end

     0   :  { %s1648_s12 = smov 0   ;;  %s1650_s13 = smov 0   ;;  %s2569_s0 = inlined_call_operand.vmem [shape: f32[36,2304], index: 0, kind: input, shape index: {}]   ;;  %s2570_s1 = inlined_call_operand.vmem [shape: f32[4,10,36], index: 1, kind: input, shape index: {}]   ;;  %s2571_s2 = inlined_call_operand.vmem [shape: f32[10,1], index: 2, kind: input, shape index: {}]   ;;  %s2572_s3 = inlined_call_operand.vmem [shape: f32[10,2304], index: 3, kind: output, shape index: {}]  }
   0x1   :  { %s1652_s14 = smov 0  }
   0x2 LB: > { %s1449_s15 = sadd.s32 4294967295, %s1625_s14   ;;  %s1665_s16 = sadd.s32 1, %s1625_s14   ;;  %s1625_s14 = sphi %s1652_s14, %s2587_s14   ;;  %s1621_s13 = sphi %s1650_s13, %s2586_s13   ;;  %s1617_s12 = sphi %s1648_s12, %s2585_s12  }
   0x3   : > { %s17_s17 = ssub.s32 %s1625_s14, %s1665_s16  ;;  %s20_s18 = sadd.s32 1, %s1621_s13 }
   0x4   : > { %p18_p0 = scmp.eq.s32.totalorder %s17_s17, 0  ;;  %p27_p1 = scmp.ne.s32.totalorder %s1621_s13, %s1617_s12 }
   0x5   : > { %p28_p2 = scmp.eq.s32.totalorder %s1625_s14, 0  ;;  %p99_p3 = scmp.eq.s32.totalorder %s1449_s15, 1 }
   0x6   : > { %s1676_s19 = scalar_select %p18_p0, %s1621_s13, %s20_s18  }
   0x7   : > { %p29_p4 = por %p28_p2, %p27_p1  ;;  %p1678_p5 = por %p99_p3, %p27_p1 }
   0x8   : > { %p1452_p6 = scmp.ge.s32.totalorder %s1625_s14, 2 }
   0xa   : > { %127 = sbr.rel (%p1452_p6) target bundleno = 65 (0x41), region = 24 }
   0xf   : > { %130 = sbr.rel (!%p29_p4) target bundleno = 65 (0x41), region = 28  ;;  %s132_s21 = sand.u32 (%p29_p4), 1, %s1621_s13  }
  0x10   : > { %s1572_s22 = smul.u32 (%p29_p4), 72, %s1625_s14 }
  0x11   : > { %s1574_s23 = smul.u32 (%p29_p4), 360, %s132_s21 }
  0x12   : > { %s1688_s26 = scalar_lea.vmem (%p29_p4), %s2569_s0, %s1572_s22 }
  0x13   : > { %v150_v0 = vld [vmem:[%s1688_s26] sm:$0xff] (%p29_p4)  ;;  %v152_v1 = vld [vmem:[%s1688_s26 + $0x8] sm:$0xff] (%p29_p4)  ;;  %v154_v2 = vld [vmem:[%s1688_s26 + $0x10] sm:$0xff] (%p29_p4)  ;;  %s1693_s27 = scalar_lea.vmem (%p29_p4), [#allocation2], %s1574_s23 }
  0x14   : > { %151 = vst [vmem:[%s1693_s27] sm:$0xff] %v150_v0  ;;  %v156_v3 = vld [vmem:[%s1688_s26 + $0x18] sm:$0xff]  ;;  %v158_v4 = vld [vmem:[%s1688_s26 + $0x20] sm:$0xff]  ;;  %v160_v5 = vld [vmem:[%s1688_s26 + $0x28] sm:$0xff] }
  0x15   : > { %153 = vst [vmem:[%s1693_s27 + $0x8] sm:$0xff] %v152_v1  ;;  %v162_v6 = vld [vmem:[%s1688_s26 + $0x30] sm:$0xff]  ;;  %v164_v7 = vld [vmem:[%s1688_s26 + $0x38] sm:$0xff]  ;;  %v166_v8 = vld [vmem:[%s1688_s26 + $0x40] sm:$0xff] }
  0x16   : > { %155 = vst [vmem:[%s1693_s27 + $0x10] sm:$0xff] %v154_v2  ;;  %v168_v9 = vld [vmem:[%s1688_s26 + $0x90] sm:$0xff]  ;;  %v170_v10 = vld [vmem:[%s1688_s26 + $0x98] sm:$0xff]  ;;  %v172_v11 = vld [vmem:[%s1688_s26 + $0xa0] sm:$0xff] }
  0x17   : > { %157 = vst [vmem:[%s1693_s27 + $0x18] sm:$0xff] %v156_v3  ;;  %v174_v12 = vld [vmem:[%s1688_s26 + $0xa8] sm:$0xff]  ;;  %v176_v13 = vld [vmem:[%s1688_s26 + $0xb0] sm:$0xff]  ;;  %v178_v14 = vld [vmem:[%s1688_s26 + $0xb8] sm:$0xff] }
  0x18   : > { %159 = vst [vmem:[%s1693_s27 + $0x20] sm:$0xff] %v158_v4  ;;  %v180_v15 = vld [vmem:[%s1688_s26 + $0xc0] sm:$0xff]  ;;  %v182_v16 = vld [vmem:[%s1688_s26 + $0xc8] sm:$0xff]  ;;  %v184_v17 = vld [vmem:[%s1688_s26 + $0xd0] sm:$0xff] }
  0x19   : > { %161 = vst [vmem:[%s1693_s27 + $0x28] sm:$0xff] %v160_v5  ;;  %v186_v18 = vld [vmem:[%s1688_s26 + $0x120] sm:$0xff]  ;;  %v188_v19 = vld [vmem:[%s1688_s26 + $0x128] sm:$0xff]  ;;  %v190_v20 = vld [vmem:[%s1688_s26 + $0x130] sm:$0xff] }
  0x1a   : > { %163 = vst [vmem:[%s1693_s27 + $0x30] sm:$0xff] %v162_v6  ;;  %v192_v21 = vld [vmem:[%s1688_s26 + $0x138] sm:$0xff]  ;;  %v194_v22 = vld [vmem:[%s1688_s26 + $0x140] sm:$0xff]  ;;  %v196_v23 = vld [vmem:[%s1688_s26 + $0x148] sm:$0xff] }
  0x1b   : > { %165 = vst [vmem:[%s1693_s27 + $0x38] sm:$0xff] %v164_v7  ;;  %v198_v24 = vld [vmem:[%s1688_s26 + $0x150] sm:$0xff]  ;;  %v200_v25 = vld [vmem:[%s1688_s26 + $0x158] sm:$0xff]  ;;  %v202_v26 = vld [vmem:[%s1688_s26 + $0x160] sm:$0xff] }
  0x1c   : > { %167 = vst [vmem:[%s1693_s27 + $0x40] sm:$0xff] %v166_v8  ;;  %v204_v27 = vld [vmem:[%s1688_s26 + $0x1b0] sm:$0xff]  ;;  %v206_v28 = vld [vmem:[%s1688_s26 + $0x1b8] sm:$0xff]  ;;  %v208_v29 = vld [vmem:[%s1688_s26 + $0x1c0] sm:$0xff] }
  0x1d   : > { %169 = vst [vmem:[%s1693_s27 + $0x48] sm:$0xff] %v168_v9  ;;  %v210_v30 = vld [vmem:[%s1688_s26 + $0x1c8] sm:$0xff]  ;;  %v212_v31 = vld [vmem:[%s1688_s26 + $0x1d0] sm:$0xff]  ;;  %v214_v32 = vld [vmem:[%s1688_s26 + $0x1d8] sm:$0xff] }
  0x1e   : > { %171 = vst [vmem:[%s1693_s27 + $0x50] sm:$0xff] %v170_v10  ;;  %v216_v33 = vld [vmem:[%s1688_s26 + $0x1e0] sm:$0xff]  ;;  %v218_v34 = vld [vmem:[%s1688_s26 + $0x1e8] sm:$0xff]  ;;  %v220_v35 = vld [vmem:[%s1688_s26 + $0x1f0] sm:$0xff] }
  0x1f   : > { %173 = vst [vmem:[%s1693_s27 + $0x58] sm:$0xff] %v172_v11  ;;  %v222_v36 = vld [vmem:[%s1688_s26 + $0x240] sm:$0xff]  ;;  %v224_v37 = vld [vmem:[%s1688_s26 + $0x248] sm:$0xff]  ;;  %v226_v38 = vld [vmem:[%s1688_s26 + $0x250] sm:$0xff] }
  0x20   : > { %175 = vst [vmem:[%s1693_s27 + $0x60] sm:$0xff] %v174_v12  ;;  %v228_v39 = vld [vmem:[%s1688_s26 + $0x258] sm:$0xff]  ;;  %v230_v40 = vld [vmem:[%s1688_s26 + $0x260] sm:$0xff]  ;;  %v232_v41 = vld [vmem:[%s1688_s26 + $0x268] sm:$0xff] }
  0x21   : > { %177 = vst [vmem:[%s1693_s27 + $0x68] sm:$0xff] %v176_v13  ;;  %v234_v42 = vld [vmem:[%s1688_s26 + $0x270] sm:$0xff]  ;;  %v236_v43 = vld [vmem:[%s1688_s26 + $0x278] sm:$0xff]  ;;  %v238_v44 = vld [vmem:[%s1688_s26 + $0x280] sm:$0xff] }
  0x22   : > { %179 = vst [vmem:[%s1693_s27 + $0x70] sm:$0xff] %v178_v14 }
  0x23   : > { %181 = vst [vmem:[%s1693_s27 + $0x78] sm:$0xff] %v180_v15 }
  0x24   : > { %183 = vst [vmem:[%s1693_s27 + $0x80] sm:$0xff] %v182_v16 }
  0x25   : > { %185 = vst [vmem:[%s1693_s27 + $0x88] sm:$0xff] %v184_v17 }
  0x26   : > { %187 = vst [vmem:[%s1693_s27 + $0x90] sm:$0xff] %v186_v18 }
  0x27   : > { %189 = vst [vmem:[%s1693_s27 + $0x98] sm:$0xff] %v188_v19 }
  0x28   : > { %191 = vst [vmem:[%s1693_s27 + $0xa0] sm:$0xff] %v190_v20 }
  0x29   : > { %193 = vst [vmem:[%s1693_s27 + $0xa8] sm:$0xff] %v192_v21 }
  0x2a   : > { %195 = vst [vmem:[%s1693_s27 + $0xb0] sm:$0xff] %v194_v22 }
  0x2b   : > { %197 = vst [vmem:[%s1693_s27 + $0xb8] sm:$0xff] %v196_v23 }
  0x2c   : > { %199 = vst [vmem:[%s1693_s27 + $0xc0] sm:$0xff] %v198_v24 }
  0x2d   : > { %201 = vst [vmem:[%s1693_s27 + $0xc8] sm:$0xff] %v200_v25 }
  0x2e   : > { %203 = vst [vmem:[%s1693_s27 + $0xd0] sm:$0xff] %v202_v26 }
  0x2f   : > { %205 = vst [vmem:[%s1693_s27 + $0xd8] sm:$0xff] %v204_v27 }
  0x30   : > { %207 = vst [vmem:[%s1693_s27 + $0xe0] sm:$0xff] %v206_v28 }
  0x31   : > { %209 = vst [vmem:[%s1693_s27 + $0xe8] sm:$0xff] %v208_v29 }
  0x32   : > { %211 = vst [vmem:[%s1693_s27 + $0xf0] sm:$0xff] %v210_v30 }
  0x33   : > { %213 = vst [vmem:[%s1693_s27 + $0xf8] sm:$0xff] %v212_v31 }
  0x34   : > { %215 = vst [vmem:[%s1693_s27 + $0x100] sm:$0xff] %v214_v32 }
  0x35   : > { %217 = vst [vmem:[%s1693_s27 + $0x108] sm:$0xff] %v216_v33 }
  0x36   : > { %219 = vst [vmem:[%s1693_s27 + $0x110] sm:$0xff] %v218_v34 }
  0x37   : > { %221 = vst [vmem:[%s1693_s27 + $0x118] sm:$0xff] %v220_v35 }
  0x38   : > { %223 = vst [vmem:[%s1693_s27 + $0x120] sm:$0xff] %v222_v36 }
  0x39   : > { %225 = vst [vmem:[%s1693_s27 + $0x128] sm:$0xff] %v224_v37 }
  0x3a   : > { %227 = vst [vmem:[%s1693_s27 + $0x130] sm:$0xff] %v226_v38 }
  0x3b   : > { %229 = vst [vmem:[%s1693_s27 + $0x138] sm:$0xff] %v228_v39 }
  0x3c   : > { %231 = vst [vmem:[%s1693_s27 + $0x140] sm:$0xff] %v230_v40 }
  0x3d   : > { %233 = vst [vmem:[%s1693_s27 + $0x148] sm:$0xff] %v232_v41 }
  0x3e   : > { %235 = vst [vmem:[%s1693_s27 + $0x150] sm:$0xff] %v234_v42 }
  0x3f   : > { %237 = vst [vmem:[%s1693_s27 + $0x158] sm:$0xff] %v236_v43 }
  0x40   : > { %239 = vst [vmem:[%s1693_s27 + $0x160] sm:$0xff] %v238_v44 }
  0x41 PF: > { %p1454_p7 = scmp.ge.s32.totalorder %s1625_s14, 1  ;;  %p244_p8 = scmp.lt.s32.totalorder %s1625_s14, 3 }
  0x43   : > { %p245_p9 = pnand %p1454_p7, %p244_p8 }
  0x44   : > { %s251_s28 = sand.u32 (!%p245_p9), 1, %s1617_s12  }
  0x45   : > { %248 = sbr.rel (%p245_p9) target bundleno = 371 (0x173), region = 51 }
  0x46   : > { %s1575_s29 = smul.u32 (!%p245_p9), 360, %s251_s28 }
  0x47   : > { %s1576_s5 = smul.u32 (!%p245_p9), 144, %s251_s28 }
  0x48   : > { %s1787_s30 = scalar_lea.vmem (!%p245_p9), [#allocation2], %s1575_s29 }
  0x49   : > { %s2425_s6 = scalar_lea.vmem (!%p245_p9), [#allocation3], %s1576_s5 }
  0x4a   : > { %vm329_vm0 = vcmask 1043456   ;;  %v1790_v45 = vld [vmem:[%s1787_s30 + $0x120] sm:$0xf]  ;;  %v1793_v46 = vld [vmem:[%s1787_s30 + $0x128] sm:$0xf]  ;;  %v1806_v49 = vld [vmem:[%s1787_s30 + $0xd8] sm:$0xff] }
  0x4b   : > { %v1796_v47 = vld [vmem:[%s1787_s30 + $0x130] sm:$0xf]  ;;  %1455 = vmatpush.msk.msra.mxu0 %vm329_vm0, %v1790_v45  ;;  %1458 = vmatpush.msk.msra.mxu1 %vm329_vm0, %v1793_v46  ;;  %v1803_v48 = vld [vmem:[%s1787_s30 + $0x138] sm:$0xf]  ;;  %v1809_v50 = vld [vmem:[%s1787_s30 + $0xe0] sm:$0xff]  ;;  %vm322_vm1 = vcmask 293888  }
  0x4c   : > { %1461 = vmatpush.msk.msra.mxu2 %vm329_vm0, %v1796_v47  ;;  %1464 = vmatpush.msk.msra.mxu3 %vm329_vm0, %v1803_v48  ;;  %v1816_v51 = vld [vmem:[%s1787_s30 + $0xe8] sm:$0xff]  ;;  %v1819_v52 = vld [vmem:[%s1787_s30 + $0xf0] sm:$0xff]  ;;  %v1827_v54 = vld [vmem:[%s1787_s30 + $0x98] sm:$0xff]  ;;  %v1627_v34 = vmov 0   ;;  %s1573_s12 = smul.u32 (%p1678_p5), 72, %s1449_s15 }
  0x4d   : > { %v1822_v53 = vld [vmem:[%s1787_s30 + $0x90] sm:$0xff]  ;;  %369 = vmatpush.msra.mxu0 %v1806_v49  ;;  %392 = vmatpush.msra.mxu1 %v1809_v50  ;;  %v1830_v55 = vld [vmem:[%s1787_s30 + $0xa0] sm:$0xff]  ;;  %v1833_v56 = vld [vmem:[%s1787_s30 + $0xa8] sm:$0xff] }
  0x4e   : > { %415 = vmatpush.msra.mxu2 %v1816_v51  ;;  %438 = vmatpush.msra.mxu3 %v1819_v52  ;;  %v1838_v57 = vld [vmem:[%s1787_s30 + $0x48] sm:$0xff]  ;;  %v1841_v58 = vld [vmem:[%s1787_s30 + $0x50] sm:$0xff]  ;;  %v1846_v59 = vld [vmem:[%s1787_s30 + $0x58] sm:$0xff]  ;;  %s2523_s20 = scalar_lea.vmem (%p1678_p5), %s2572_s3, %s1573_s12 }
  0x4f   : > { %370 = vmatpush.msra.mxu0 %v1822_v53  ;;  %393 = vmatpush.msra.mxu1 %v1827_v54  ;;  %v1849_v60 = vld [vmem:[%s1787_s30 + $0x60] sm:$0xff]  ;;  %v1857_v62 = vld [vmem:[%s1787_s30 + $0x8] sm:$0xff]  ;;  %v1862_v63 = vld [vmem:[%s1787_s30 + $0x10] sm:$0xff] }
  0x50   : > { %416 = vmatpush.msra.mxu2 %v1830_v55  ;;  %439 = vmatpush.msra.mxu3 %v1833_v56  ;;  %v1854_v61 = vld [vmem:[%s1787_s30] sm:$0xff]  ;;  %v1865_v0 = vld [vmem:[%s1787_s30 + $0x18] sm:$0xff]  ;;  %v1879_v2 = vld [vmem:[%s1787_s30 + $0x150] sm:$0xf] }
  0x51   : > { %371 = vmatpush.msra.mxu0 %v1838_v57  ;;  %394 = vmatpush.msra.mxu1 %v1841_v58  ;;  %v1872_v1 = vld [vmem:[%s2570_s1] sm:$0xff]  ;;  %v1892_v5 = vld [vmem:[%s1787_s30 + $0x148] sm:$0xf]  ;;  %v1902_v7 = vld [vmem:[%s1787_s30 + $0x110] sm:$0xff] }
  0x52   : > { %417 = vmatpush.msra.mxu2 %v1846_v59  ;;  %440 = vmatpush.msra.mxu3 %v1849_v60  ;;  %v1882_v3 = vld [vmem:[%s1787_s30 + $0x158] sm:$0xf]  ;;  %v1889_v4 = vld [vmem:[%s1787_s30 + $0x140] sm:$0xf]  ;;  %v1899_v6 = vld [vmem:[%s1787_s30 + $0x108] sm:$0xff] }
  0x53   : > { %372 = vmatpush.msra.mxu0 %v1854_v61  ;;  %395 = vmatpush.msra.mxu1 %v1857_v62  ;;  %v1909_v8 = vld [vmem:[%s1787_s30 + $0xf8] sm:$0xff]  ;;  %v1912_v9 = vld [vmem:[%s1787_s30 + $0x100] sm:$0xff]  ;;  %v1922_v11 = vld [vmem:[%s1787_s30 + $0xc8] sm:$0xff] }
  0x54   : > { %418 = vmatpush.msra.mxu2 %v1862_v63  ;;  %441 = vmatpush.msra.mxu3 %v1865_v0  ;;  %v1919_v10 = vld [vmem:[%s1787_s30 + $0xc0] sm:$0xff]  ;;  %v1927_v12 = vld [vmem:[%s1787_s30 + $0xb0] sm:$0xff]  ;;  %v1930_v13 = vld [vmem:[%s1787_s30 + $0xb8] sm:$0xff] }
  0x55   : > { %1456 = vmatmul.msk.f32.vlgmr.msra.gmra.mxu0 %vm322_vm1, %v1872_v1  ;;  %1459 = vmatmul.msk.f32.vlgmr.msra.gmra.mxu1 %vm322_vm1, %v1872_v1  ;;  %v1935_v14 = vld [vmem:[%s2570_s1 + $0x8] sm:$0x3]  ;;  %v1942_v15 = vld [vmem:[%s1787_s30 + $0x78] sm:$0xff]  ;;  %v1957_v18 = vld [vmem:[%s1787_s30 + $0x70] sm:$0xff] }
  0x56   : > { %1462 = vmatmul.msk.f32.vlgmr.msra.gmra.mxu2 %vm322_vm1, %v1872_v1  ;;  %1465 = vmatmul.msk.f32.vlgmr.msra.gmra.mxu3 %vm322_vm1, %v1872_v1  ;;  %v1945_v16 = vld [vmem:[%s1787_s30 + $0x80] sm:$0xff]  ;;  %v1954_v17 = vld [vmem:[%s1787_s30 + $0x68] sm:$0xff]  ;;  %v1964_v19 = vld [vmem:[%s1787_s30 + $0x30] sm:$0xff] }
  0x57   : > { %1473 = vmatpush.msk.msrb.mxu2 %vm329_vm0, %v1879_v2  ;;  %1476 = vmatpush.msk.msrb.mxu3 %vm329_vm0, %v1882_v3  ;;  %v1967_v20 = vld [vmem:[%s1787_s30 + $0x38] sm:$0xff]  ;;  %v1972_v21 = vld [vmem:[%s1787_s30 + $0x20] sm:$0xff]  ;;  %v1975_v22 = vld [vmem:[%s1787_s30 + $0x28] sm:$0xff] }
  0x58   : > { %1467 = vmatpush.msk.msrb.mxu0 %vm329_vm0, %v1889_v4  ;;  %1470 = vmatpush.msk.msrb.mxu1 %vm329_vm0, %v1892_v5  ;;  %v1982_v23 = vld [vmem:[%s1787_s30 + $0x160] sm:$0xf]  ;;  %v1999_v24 = vld [vmem:[%s1787_s30 + $0x118] sm:$0xff]  ;;  %v2008_v25 = vld [vmem:[%s1787_s30 + $0xd0] sm:$0xff] }
  0x59   : > { %507 = vmatpush.msrb.mxu2 %v1899_v6  ;;  %530 = vmatpush.msrb.mxu3 %v1902_v7  ;;  %v2015_v26 = vld [vmem:[%s1787_s30 + $0x88] sm:$0xff]  ;;  %v2028_v27 = vld [vmem:[%s1787_s30 + $0x40] sm:$0xff]  ;;  %v2072_v29 = vld [vmem:[%s2570_s1 + $0x18] sm:$0x3] }
  0x5a   : > { %461 = vmatpush.msrb.mxu0 %v1909_v8  ;;  %484 = vmatpush.msrb.mxu1 %v1912_v9  ;;  %v2045_v28 = vld [vmem:[%s2570_s1 + $0x10] sm:$0xff]  ;;  %v2147_v30 = vld [vmem:[%s2570_s1 + $0x20] sm:$0xff]  ;;  %v2176_v31 = vld [vmem:[%s2570_s1 + $0x28] sm:$0x3] }
  0x5b   : > { %508 = vmatpush.msrb.mxu2 %v1919_v10  ;;  %531 = vmatpush.msrb.mxu3 %v1922_v11  ;;  %v1266_v32 = vld [vmem:[%s2571_s2] sm:$0xff]  ;;  %v1540_v33 = vld [vmem:[%s2570_s1 + $0x30] sm:$0xff]  ;;  %v1267_v35 = vld [vmem:[%s2571_s2 + $0x8] sm:$0x3] }
  0x5c   : > { %462 = vmatpush.msrb.mxu0 %v1927_v12  ;;  %485 = vmatpush.msrb.mxu1 %v1930_v13  ;;  %v1541_v36 = vld [vmem:[%s2570_s1 + $0x38] sm:$0x3] }
  0x5d   : > { %1457 = vmatmul.msk.f32.gmra.mxu0 %vm322_vm1, %v1935_v14  ;;  %1460 = vmatmul.msk.f32.gmra.mxu1 %vm322_vm1, %v1935_v14 }
  0x5e   : > { %1463 = vmatmul.msk.f32.gmra.mxu2 %vm322_vm1, %v1935_v14  ;;  %1466 = vmatmul.msk.f32.gmra.mxu3 %vm322_vm1, %v1935_v14 }
  0x5f   : > { %509 = vmatpush.msrb.mxu2 %v1942_v15  ;;  %532 = vmatpush.msrb.mxu3 %v1945_v16 }
  0x60   : > { %463 = vmatpush.msrb.mxu0 %v1954_v17  ;;  %486 = vmatpush.msrb.mxu1 %v1957_v18 }
  0x61   : > { %510 = vmatpush.msrb.mxu2 %v1964_v19  ;;  %533 = vmatpush.msrb.mxu3 %v1967_v20 }
  0x62   : > { %464 = vmatpush.msrb.mxu0 %v1972_v21  ;;  %487 = vmatpush.msrb.mxu1 %v1975_v22 }
  0x63   : > { %1487 = vmatpush.msk.msra.mxu2 %vm329_vm0, %v1793_v46  ;;  %1490 = vmatpush.msk.msra.mxu3 %vm329_vm0, %v1796_v47 }
  0x64   : > { %1479 = vmatpush.msk.msra.mxu0 %vm329_vm0, %v1982_v23  ;;  %1484 = vmatpush.msk.msra.mxu1 %vm329_vm0, %v1790_v45 }
  0x65   : > { %1468 = vmatmul.msk.f32.vlgmr.msrb.gmra.mxu0 %vm322_vm1, %v1872_v1  ;;  %1471 = vmatmul.msk.f32.vlgmr.msrb.gmra.mxu1 %vm322_vm1, %v1872_v1 }
  0x66   : > { %1474 = vmatmul.msk.f32.vlgmr.msrb.gmra.mxu2 %vm322_vm1, %v1872_v1  ;;  %1477 = vmatmul.msk.f32.vlgmr.msrb.gmra.mxu3 %vm322_vm1, %v1872_v1 }
  0x67   : > { %608 = vmatpush.msra.mxu2 %v1809_v50  ;;  %631 = vmatpush.msra.mxu3 %v1816_v51 }
  0x68   : > { %553 = vmatpush.msra.mxu0 %v1999_v24  ;;  %585 = vmatpush.msra.mxu1 %v1806_v49 }
  0x69   : > { %609 = vmatpush.msra.mxu2 %v1827_v54  ;;  %632 = vmatpush.msra.mxu3 %v1830_v55 }
  0x6a   : > { %554 = vmatpush.msra.mxu0 %v2008_v25  ;;  %586 = vmatpush.msra.mxu1 %v1822_v53 }
  0x6b   : > { %610 = vmatpush.msra.mxu2 %v1841_v58  ;;  %633 = vmatpush.msra.mxu3 %v1846_v59 }
  0x6c   : > { %555 = vmatpush.msra.mxu0 %v2015_v26  ;;  %587 = vmatpush.msra.mxu1 %v1838_v57 }
  0x6d   : > { %1469 = vmatmul.msk.f32.gmra.mxu0 %vm322_vm1, %v1935_v14  ;;  %1472 = vmatmul.msk.f32.gmra.mxu1 %vm322_vm1, %v1935_v14 }
  0x6e   : > { %1475 = vmatmul.msk.f32.gmra.mxu2 %vm322_vm1, %v1935_v14  ;;  %1478 = vmatmul.msk.f32.gmra.mxu3 %vm322_vm1, %v1935_v14 }
  0x6f   : > { %611 = vmatpush.msra.mxu2 %v1857_v62  ;;  %634 = vmatpush.msra.mxu3 %v1862_v63 }
  0x70   : > { %556 = vmatpush.msra.mxu0 %v2028_v27  ;;  %588 = vmatpush.msra.mxu1 %v1854_v61 }
  0x71   : > { %1499 = vmatpush.msk.msrb.mxu2 %vm329_vm0, %v1892_v5  ;;  %1502 = vmatpush.msk.msrb.mxu3 %vm329_vm0, %v1879_v2 }
  0x72   : > { %1493 = vmatpush.msk.msrb.mxu0 %vm329_vm0, %v1803_v48  ;;  %1496 = vmatpush.msk.msrb.mxu1 %vm329_vm0, %v1889_v4 }
  0x73   : > { %700 = vmatpush.msrb.mxu2 %v1912_v9  ;;  %723 = vmatpush.msrb.mxu3 %v1899_v6 }
  0x74   : > { %654 = vmatpush.msrb.mxu0 %v1819_v52  ;;  %677 = vmatpush.msrb.mxu1 %v1909_v8 }
  0x75   : > { %1480 = vmatmul.msk.f32.vlgmr.msra.gmra.mxu0 %vm322_vm1, %v1872_v1  ;;  %1485 = vmatmul.msk.f32.vlgmr.msra.gmra.mxu1 %vm322_vm1, %v2045_v28 }
  0x76   : > { %1488 = vmatmul.msk.f32.vlgmr.msra.gmra.mxu2 %vm322_vm1, %v2045_v28  ;;  %1491 = vmatmul.msk.f32.vlgmr.msra.gmra.mxu3 %vm322_vm1, %v2045_v28 }
  0x77   : > { %701 = vmatpush.msrb.mxu2 %v1930_v13  ;;  %724 = vmatpush.msrb.mxu3 %v1919_v10 }
  0x78   : > { %655 = vmatpush.msrb.mxu0 %v1833_v56  ;;  %678 = vmatpush.msrb.mxu1 %v1927_v12 }
  0x79   : > { %702 = vmatpush.msrb.mxu2 %v1957_v18  ;;  %725 = vmatpush.msrb.mxu3 %v1942_v15 }
  0x7a   : > { %656 = vmatpush.msrb.mxu0 %v1849_v60  ;;  %679 = vmatpush.msrb.mxu1 %v1954_v17 }
  0x7b   : > { %703 = vmatpush.msrb.mxu2 %v1975_v22  ;;  %726 = vmatpush.msrb.mxu3 %v1964_v19 }
  0x7c   : > { %657 = vmatpush.msrb.mxu0 %v1865_v0  ;;  %680 = vmatpush.msrb.mxu1 %v1972_v21 }
  0x7d   : > { %1481 = vmatmul.msk.f32.gmra.mxu0 %vm322_vm1, %v1935_v14  ;;  %1486 = vmatmul.msk.f32.gmra.mxu1 %vm322_vm1, %v2072_v29 }
  0x7e   : > { %1489 = vmatmul.msk.f32.gmra.mxu2 %vm322_vm1, %v2072_v29  ;;  %1492 = vmatmul.msk.f32.gmra.mxu3 %vm322_vm1, %v2072_v29 }
  0x7f   : > { %1513 = vmatpush.msk.msra.mxu2 %vm329_vm0, %v1790_v45  ;;  %1516 = vmatpush.msk.msra.mxu3 %vm329_vm0, %v1793_v46 }
  0x80   : > { %1505 = vmatpush.msk.msra.mxu0 %vm329_vm0, %v1882_v3  ;;  %1508 = vmatpush.msk.msra.mxu1 %vm329_vm0, %v1982_v23 }
  0x81   : > { %819 = vmatpush.msra.mxu2 %v1806_v49  ;;  %842 = vmatpush.msra.mxu3 %v1809_v50 }
  0x82   : > { %746 = vmatpush.msra.mxu0 %v1902_v7  ;;  %769 = vmatpush.msra.mxu1 %v1999_v24 }
  0x83   : > { %820 = vmatpush.msra.mxu2 %v1822_v53  ;;  %843 = vmatpush.msra.mxu3 %v1827_v54 }
  0x84   : > { %747 = vmatpush.msra.mxu0 %v1922_v11  ;;  %770 = vmatpush.msra.mxu1 %v2008_v25 }
  0x85   : > { %1494 = vmatmul.msk.f32.vlgmr.msrb.gmra.mxu0 %vm322_vm1, %v2045_v28  ;;  %1497 = vmatmul.msk.f32.vlgmr.msrb.gmra.mxu1 %vm322_vm1, %v2045_v28 }
  0x86   : > { %1500 = vmatmul.msk.f32.vlgmr.msrb.gmra.mxu2 %vm322_vm1, %v2045_v28  ;;  %1503 = vmatmul.msk.f32.vlgmr.msrb.gmra.mxu3 %vm322_vm1, %v2045_v28 }
  0x87   : > { %821 = vmatpush.msra.mxu2 %v1838_v57  ;;  %844 = vmatpush.msra.mxu3 %v1841_v58 }
  0x88   : > { %748 = vmatpush.msra.mxu0 %v1945_v16  ;;  %771 = vmatpush.msra.mxu1 %v2015_v26 }
  0x89   : > { %822 = vmatpush.msra.mxu2 %v1854_v61  ;;  %845 = vmatpush.msra.mxu3 %v1857_v62 }
  0x8a   : > { %749 = vmatpush.msra.mxu0 %v1967_v20  ;;  %772 = vmatpush.msra.mxu1 %v2028_v27 }
  0x8b   : > { %1525 = vmatpush.msk.msrb.mxu2 %vm329_vm0, %v1889_v4  ;;  %1528 = vmatpush.msk.msrb.mxu3 %vm329_vm0, %v1892_v5 }
  0x8c   : > { %1519 = vmatpush.msk.msrb.mxu0 %vm329_vm0, %v1796_v47  ;;  %1522 = vmatpush.msk.msrb.mxu1 %vm329_vm0, %v1803_v48 }
  0x8d   : > { %1495 = vmatmul.msk.f32.gmra.mxu0 %vm322_vm1, %v2072_v29  ;;  %1498 = vmatmul.msk.f32.gmra.mxu1 %vm322_vm1, %v2072_v29 }
  0x8e   : > { %1501 = vmatmul.msk.f32.gmra.mxu2 %vm322_vm1, %v2072_v29  ;;  %1504 = vmatmul.msk.f32.gmra.mxu3 %vm322_vm1, %v2072_v29 }
  0x8f   : > { %911 = vmatpush.msrb.mxu2 %v1909_v8  ;;  %934 = vmatpush.msrb.mxu3 %v1912_v9 }
  0x90   : > { %865 = vmatpush.msrb.mxu0 %v1816_v51  ;;  %888 = vmatpush.msrb.mxu1 %v1819_v52 }
  0x91   : > { %912 = vmatpush.msrb.mxu2 %v1927_v12  ;;  %935 = vmatpush.msrb.mxu3 %v1930_v13 }
  0x92   : > { %866 = vmatpush.msrb.mxu0 %v1830_v55  ;;  %889 = vmatpush.msrb.mxu1 %v1833_v56 }
  0x93   : > { %913 = vmatpush.msrb.mxu2 %v1954_v17  ;;  %936 = vmatpush.msrb.mxu3 %v1957_v18 }
  0x94   : > { %867 = vmatpush.msrb.mxu0 %v1846_v59  ;;  %890 = vmatpush.msrb.mxu1 %v1849_v60 }
  0x95   : > { %1506 = vmatmul.msk.f32.vlgmr.msra.gmra.mxu0 %vm322_vm1, %v2045_v28  ;;  %1509 = vmatmul.msk.f32.vlgmr.msra.gmra.mxu1 %vm322_vm1, %v2045_v28 }
  0x96   : > { %1514 = vmatmul.msk.f32.vlgmr.msra.gmra.mxu2 %vm322_vm1, %v2147_v30  ;;  %1517 = vmatmul.msk.f32.vlgmr.msra.gmra.mxu3 %vm322_vm1, %v2147_v30 }
  0x97   : > { %914 = vmatpush.msrb.mxu2 %v1972_v21  ;;  %937 = vmatpush.msrb.mxu3 %v1975_v22 }
  0x98   : > { %868 = vmatpush.msrb.mxu0 %v1862_v63  ;;  %891 = vmatpush.msrb.mxu1 %v1865_v0 }
  0x99   : > { %1537 = vmatpush.msk.msra.mxu2 %vm329_vm0, %v1982_v23  ;;  %1542 = vmatpush.msk.msra.mxu3 %vm329_vm0, %v1790_v45 }
  0x9a   : > { %1531 = vmatpush.msk.msra.mxu0 %vm329_vm0, %v1879_v2  ;;  %1534 = vmatpush.msk.msra.mxu1 %vm329_vm0, %v1882_v3 }
  0x9b   : > { %1003 = vmatpush.msra.mxu2 %v1999_v24  ;;  %1053 = vmatpush.msra.mxu3 %v1806_v49 }
  0x9c   : > { %957 = vmatpush.msra.mxu0 %v1899_v6  ;;  %980 = vmatpush.msra.mxu1 %v1902_v7 }
  0x9d   : > { %1507 = vmatmul.msk.f32.gmra.mxu0 %vm322_vm1, %v2072_v29  ;;  %1510 = vmatmul.msk.f32.gmra.mxu1 %vm322_vm1, %v2072_v29 }
  0x9e   : > { %1515 = vmatmul.msk.f32.gmra.mxu2 %vm322_vm1, %v2176_v31  ;;  %1518 = vmatmul.msk.f32.gmra.mxu3 %vm322_vm1, %v2176_v31 }
  0x9f   : > { %1004 = vmatpush.msra.mxu2 %v2008_v25  ;;  %1054 = vmatpush.msra.mxu3 %v1822_v53 }
  0xa0   : > { %958 = vmatpush.msra.mxu0 %v1919_v10  ;;  %981 = vmatpush.msra.mxu1 %v1922_v11 }
  0xa1   : > { %1005 = vmatpush.msra.mxu2 %v2015_v26  ;;  %1055 = vmatpush.msra.mxu3 %v1838_v57 }
  0xa2   : > { %959 = vmatpush.msra.mxu0 %v1942_v15  ;;  %982 = vmatpush.msra.mxu1 %v1945_v16 }
  0xa3   : > { %1006 = vmatpush.msra.mxu2 %v2028_v27  ;;  %1056 = vmatpush.msra.mxu3 %v1854_v61 }
  0xa4   : > { %960 = vmatpush.msra.mxu0 %v1964_v19  ;;  %983 = vmatpush.msra.mxu1 %v1967_v20 }
  0xa5   : > { %1520 = vmatmul.msk.f32.vlgmr.msrb.gmra.mxu0 %vm322_vm1, %v2147_v30  ;;  %1523 = vmatmul.msk.f32.vlgmr.msrb.gmra.mxu1 %vm322_vm1, %v2147_v30 }
  0xa6   : > { %1526 = vmatmul.msk.f32.vlgmr.msrb.gmra.mxu2 %vm322_vm1, %v2147_v30  ;;  %1529 = vmatmul.msk.f32.vlgmr.msrb.gmra.mxu3 %vm322_vm1, %v2147_v30 }
  0xa7   : > { %1551 = vmatpush.msk.msrb.mxu2 %vm329_vm0, %v1803_v48  ;;  %1554 = vmatpush.msk.msrb.mxu3 %vm329_vm0, %v1889_v4 }
  0xa8   : > { %1545 = vmatpush.msk.msrb.mxu0 %vm329_vm0, %v1793_v46  ;;  %1548 = vmatpush.msk.msrb.mxu1 %vm329_vm0, %v1796_v47 }
  0xa9   : > { %1122 = vmatpush.msrb.mxu2 %v1819_v52  ;;  %1145 = vmatpush.msrb.mxu3 %v1909_v8 }
  0xaa   : > { %1076 = vmatpush.msrb.mxu0 %v1809_v50  ;;  %1099 = vmatpush.msrb.mxu1 %v1816_v51 }
  0xab   : > { %1123 = vmatpush.msrb.mxu2 %v1833_v56  ;;  %1146 = vmatpush.msrb.mxu3 %v1927_v12 }
  0xac   : > { %1077 = vmatpush.msrb.mxu0 %v1827_v54  ;;  %1100 = vmatpush.msrb.mxu1 %v1830_v55 }
  0xad   : > { %1521 = vmatmul.msk.f32.gmra.mxu0 %vm322_vm1, %v2176_v31  ;;  %1524 = vmatmul.msk.f32.gmra.mxu1 %vm322_vm1, %v2176_v31 }
  0xae   : > { %1527 = vmatmul.msk.f32.gmra.mxu2 %vm322_vm1, %v2176_v31  ;;  %1530 = vmatmul.msk.f32.gmra.mxu3 %vm322_vm1, %v2176_v31 }
  0xaf   : > { %1124 = vmatpush.msrb.mxu2 %v1849_v60  ;;  %1147 = vmatpush.msrb.mxu3 %v1954_v17 }
  0xb0   : > { %1078 = vmatpush.msrb.mxu0 %v1841_v58  ;;  %1101 = vmatpush.msrb.mxu1 %v1846_v59 }
  0xb1   : > { %1125 = vmatpush.msrb.mxu2 %v1865_v0  ;;  %1148 = vmatpush.msrb.mxu3 %v1972_v21 }
  0xb2   : > { %1079 = vmatpush.msrb.mxu0 %v1857_v62  ;;  %1102 = vmatpush.msrb.mxu1 %v1862_v63 }
  0xb3   : > { %1602 = vset.pattern.permute.xlu0 %v1627_v34 }
  0xb4   : > { %1270 = vperm.xlu0 %1602, %v1266_v32  }
  0xb5   : > { %1532 = vmatmul.msk.f32.vlgmr.msra.gmra.mxu0 %vm322_vm1, %v2147_v30  ;;  %1535 = vmatmul.msk.f32.vlgmr.msra.gmra.mxu1 %vm322_vm1, %v2147_v30 }
  0xb6   : > { %1538 = vmatmul.msk.f32.vlgmr.msra.gmra.mxu2 %vm322_vm1, %v2147_v30  ;;  %1543 = vmatmul.msk.f32.vlgmr.msra.gmra.mxu3 %vm322_vm1, %v1540_v33 }
  0xb7   : > { %1563 = vmatpush.msk.msra.mxu2 %vm329_vm0, %v1882_v3  ;;  %1566 = vmatpush.msk.msra.mxu3 %vm329_vm0, %v1982_v23 }
  0xb8   : > { %1557 = vmatpush.msk.msra.mxu0 %vm329_vm0, %v1892_v5  ;;  %1560 = vmatpush.msk.msra.mxu1 %vm329_vm0, %v1879_v2 }
  0xb9   : > { %1214 = vmatpush.msra.mxu2 %v1902_v7  ;;  %1237 = vmatpush.msra.mxu3 %v1999_v24 }
  0xba   : > { %1168 = vmatpush.msra.mxu0 %v1912_v9  ;;  %1191 = vmatpush.msra.mxu1 %v1899_v6 }
  0xbb   : > { %1215 = vmatpush.msra.mxu2 %v1922_v11  ;;  %1238 = vmatpush.msra.mxu3 %v2008_v25 }
  0xbc   : > { %1275 = vperm.xlu0 %1602, %v1267_v35   ;;  %1169 = vmatpush.msra.mxu0 %v1930_v13 }
  0xbd   : > { %1533 = vmatmul.msk.f32.gmra.mxu0 %vm322_vm1, %v2176_v31  ;;  %1536 = vmatmul.msk.f32.gmra.mxu1 %vm322_vm1, %v2176_v31 }
  0xbe   : > { %1539 = vmatmul.msk.f32.gmra.mxu2 %vm322_vm1, %v2176_v31  ;;  %1544 = vmatmul.msk.f32.gmra.mxu3 %vm322_vm1, %v1541_v36 }
  0xbf   : > { %1216 = vmatpush.msra.mxu2 %v1945_v16  ;;  %1239 = vmatpush.msra.mxu3 %v2015_v26 }
  0xc0   : > { %1192 = vmatpush.msra.mxu1 %v1919_v10  ;;  %1170 = vmatpush.msra.mxu0 %v1957_v18 }
  0xc1   : > { %1217 = vmatpush.msra.mxu2 %v1967_v20  ;;  %1240 = vmatpush.msra.mxu3 %v2028_v27 }
  0xc2   : > { %1193 = vmatpush.msra.mxu1 %v1942_v15  ;;  %1171 = vmatpush.msra.mxu0 %v1975_v22 }
  0xc4   : > { %1194 = vmatpush.msra.mxu1 %v1964_v19 }
  0xc5   : > { %1546 = vmatmul.msk.f32.vlgmr.msrb.gmra.mxu0 %vm322_vm1, %v1540_v33  ;;  %1549 = vmatmul.msk.f32.vlgmr.msrb.gmra.mxu1 %vm322_vm1, %v1540_v33 }
  0xc6   : > { %1552 = vmatmul.msk.f32.vlgmr.msrb.gmra.mxu2 %vm322_vm1, %v1540_v33  ;;  %1555 = vmatmul.msk.f32.vlgmr.msrb.gmra.mxu3 %vm322_vm1, %v1540_v33 }
  0xcd   : > { %1547 = vmatmul.msk.f32.gmra.mxu0 %vm322_vm1, %v1541_v36  ;;  %1550 = vmatmul.msk.f32.gmra.mxu1 %vm322_vm1, %v1541_v36 }
  0xce   : > { %1553 = vmatmul.msk.f32.gmra.mxu2 %vm322_vm1, %v1541_v36  ;;  %1556 = vmatmul.msk.f32.gmra.mxu3 %vm322_vm1, %v1541_v36 }
  0xd2   : > { %v2300_v37 = vpop.f32.mrf.mxu0  ;;  %v2302_v38 = vpop.f32.mrf.mxu1 }
  0xd5   : > { %1558 = vmatmul.msk.f32.vlgmr.msra.gmra.mxu0 %vm322_vm1, %v1540_v33  ;;  %1561 = vmatmul.msk.f32.vlgmr.msra.gmra.mxu1 %vm322_vm1, %v1540_v33 }
  0xd6   : > { %1564 = vmatmul.msk.f32.vlgmr.msra.gmra.mxu2 %vm322_vm1, %v1540_v33  ;;  %1567 = vmatmul.msk.f32.vlgmr.msra.gmra.mxu3 %vm322_vm1, %v1540_v33 }
  0xd9   : > { %v2308_v39 = vpop.f32.mrf.mxu2  ;;  %v2310_v40 = vpop.f32.mrf.mxu3 }
  0xda   : > { %v2312_v41 = vpop.f32.mrf.mxu0  ;;  %v2314_v42 = vpop.f32.mrf.mxu1 }
  0xdd   : > { %1559 = vmatmul.msk.f32.gmra.mxu0 %vm322_vm1, %v1541_v36  ;;  %1562 = vmatmul.msk.f32.gmra.mxu1 %vm322_vm1, %v1541_v36 }
  0xde   : > { %1565 = vmatmul.msk.f32.gmra.mxu2 %vm322_vm1, %v1541_v36  ;;  %1568 = vmatmul.msk.f32.gmra.mxu3 %vm322_vm1, %v1541_v36 }
  0xe1   : > { %v2320_v43 = vpop.f32.mrf.mxu2  ;;  %v2322_v44 = vpop.f32.mrf.mxu3 }
  0xe2   : > { %v2324_v45 = vpop.f32.mrf.mxu0  ;;  %v2326_v46 = vpop.f32.mrf.mxu1 }
  0xe9   : > { %v2328_v47 = vpop.f32.mrf.mxu2  ;;  %v2330_v48 = vpop.f32.mrf.mxu3 }
  0xea   : > { %v2332_v49 = vpop.f32.mrf.mxu0  ;;  %v2334_v50 = vpop.f32.mrf.mxu1 }
  0xf1   : > { %v2336_v51 = vpop.f32.mrf.mxu2  ;;  %v2338_v52 = vpop.f32.mrf.mxu3 }
  0xf2   : > { %v2340_v53 = vpop.f32.mrf.mxu0  ;;  %v590_v54 = vpop.f32.mrf.mxu1 }
  0xf3   : > { %v780_v55 = vmax.f32 %v2300_v37, %v590_v54 }
  0xf9   : > { %v2343_v56 = vpop.f32.mrf.mxu2  ;;  %v2345_v57 = vpop.f32.mrf.mxu3 }
  0xfa   : > { %v781_v58 = vmax.f32 %v2302_v38, %v2343_v56  ;;  %v782_v59 = vmax.f32 %v2308_v39, %v2345_v57  ;;  %v2351_v60 = vpop.f32.mrf.mxu0  ;;  %v593_v61 = vpop.f32.mrf.mxu1 }
  0xfb   : > { %v789_v62 = vmax.f32 %v2312_v41, %v593_v61 }
 0x101   : > { %v2354_v63 = vpop.f32.mrf.mxu2  ;;  %v2356_v0 = vpop.f32.mrf.mxu3 }
 0x102   : > { %v790_v1 = vmax.f32 %v2314_v42, %v2354_v63  ;;  %v2362_v3 = vpop.f32.mrf.mxu0  ;;  %v2364_v4 = vpop.f32.mrf.mxu1 }
 0x103   : > { %v783_v5 = vmax.f32 %v2310_v40, %v2362_v3  ;;  %v784_v6 = vmax.f32 %v2324_v45, %v2364_v4 }
 0x109   : > { %v2370_v7 = vpop.f32.mrf.mxu2  ;;  %v2372_v8 = vpop.f32.mrf.mxu3 }
 0x10a   : > { %v2378_v11 = vpop.f32.mrf.mxu0  ;;  %v2380_v12 = vpop.f32.mrf.mxu1 }
 0x111   : > { %v2386_v15 = vpop.f32.mrf.mxu2  ;;  %v2388_v16 = vpop.f32.mrf.mxu3 }
 0x112   : > { %v2394_v19 = vpop.f32.mrf.mxu0  ;;  %v2396_v20 = vpop.f32.mrf.mxu1 }
 0x119   : > { %v824_v23 = vpop.f32.mrf.mxu2  ;;  %v847_v24 = vpop.f32.mrf.mxu3 }
 0x11a   : > { %v2402_v25 = vpop.f32.mrf.mxu0  ;;  %v2404_v26 = vpop.f32.mrf.mxu1  ;;  %v1014_v56 = vmax.f32 %v780_v55, %v824_v23  ;;  %v1015_v55 = vmax.f32 %v781_v58, %v847_v24 }
 0x121   : > { %v827_v29 = vpop.f32.mrf.mxu2  ;;  %v850_v30 = vpop.f32.mrf.mxu3 }
 0x122   : > { %v870_v31 = vpop.f32.mrf.mxu0  ;;  %v893_v32 = vpop.f32.mrf.mxu1  ;;  %v1023_v21 = vmax.f32 %v789_v62, %v827_v29 }
 0x123   : > { %v1016_v23 = vmax.f32 %v782_v59, %v870_v31  ;;  %v1017_v24 = vmax.f32 %v783_v5, %v893_v32 }
 0x126   : > { %v2414_v54 = vpop.permute.xlu0 %1270 }
 0x129   : > { %v916_v33 = vpop.f32.mrf.mxu2  ;;  %v939_v34 = vpop.f32.mrf.mxu3 }
 0x12a   : > { %v873_v35 = vpop.f32.mrf.mxu0  ;;  %v896_v36 = vpop.f32.mrf.mxu1 }
 0x12e   : > { %v2428_v10 = vpop.permute.xlu0 %1275 }
 0x131   : > { %v919_v37 = vpop.f32.mrf.mxu2  ;;  %v2410_v38 = vpop.f32.mrf.mxu3 }
 0x132   : > { %v962_v39 = vpop.f32.mrf.mxu0  ;;  %v2412_v41 = vpop.f32.mrf.mxu1 }
 0x139   : > { %v2416_v57 = vpop.f32.mrf.mxu2  ;;  %v1058_v61 = vpop.f32.mrf.mxu3 }
 0x13a   : > { %v1248_v28 = vmax.f32 %v1014_v56, %v1058_v61  ;;  %v2420_v27 = vpop.f32.mrf.mxu0  ;;  %v2422_v18 = vpop.f32.mrf.mxu1 }
 0x13c   : > { %v1278_v17 = vadd.f32 %v2414_v54, %v1248_v28 }
 0x13e   : > { %v1296_v22 = vmax.f32 %v1278_v17, 0.0 }
 0x140   : > { %1314 = vst [vmem:[%s2425_s6] sm:$0xff] %v1296_v22 }
 0x141   : > { %v2430_v9 = vpop.f32.mrf.mxu2  ;;  %v1061_v56 = vpop.f32.mrf.mxu3 }
 0x142   : > { %v1257_v61 = vmax.f32 %v1023_v21, %v1061_v56  ;;  %v1081_v14 = vpop.f32.mrf.mxu0  ;;  %v1104_v13 = vpop.f32.mrf.mxu1  ;;  %v1018_v21 = vmax.f32 %v784_v6, %v916_v33  ;;  %v2575_v33 = vmax.f32 %v2322_v44, %v2378_v11  ;;  %v2576_v56 = vmax.f32 %v2332_v49, %v2380_v12 }
 0x143   : > { %v1249_v2 = vmax.f32 %v1015_v55, %v1081_v14  ;;  %v1250_v17 = vmax.f32 %v1016_v23, %v1104_v13  ;;  %v1024_v13 = vmax.f32 %v790_v1, %v850_v30 }
 0x144   : > { %v1287_v62 = vadd.f32 %v2428_v10, %v1257_v61  ;;  %v1027_v61 = vmax.f32 %v2576_v56, %v919_v37 }
 0x145   : > { %v1279_v28 = vadd.f32 %v2414_v54, %v1249_v2  ;;  %v1280_v22 = vadd.f32 %v2414_v54, %v1250_v17  ;;  %v2574_v2 = vmax.f32 %v2320_v43, %v2356_v0  ;;  %v2577_v17 = vmax.f32 %v2326_v46, %v2370_v7 }
 0x146   : > { %v1305_v29 = vmax.f32 %v1287_v62, 0.0 }
 0x147   : > { %v1297_v58 = vmax.f32 %v1279_v28, 0.0  ;;  %v1298_v59 = vmax.f32 %v1280_v22, 0.0  ;;  %v1025_v14 = vmax.f32 %v2574_v2, %v873_v35  ;;  %v1026_v35 = vmax.f32 %v2575_v33, %v896_v36 }
 0x148   : > { %1323 = vst [vmem:[%s2425_s6 + $0x48] sm:$0x3] %v1305_v29  ;;  %v1019_v62 = vmax.f32 %v2577_v17, %v939_v34  ;;  %v2578_v28 = vmax.f32 %v2328_v47, %v2372_v8  ;;  %v2580_v2 = vmax.f32 %v2340_v53, %v2396_v20 }
 0x149   : > { %1315 = vst [vmem:[%s2425_s6 + $0x8] sm:$0xff] %v1297_v58  ;;  %v1127_v31 = vpop.f32.mrf.mxu2  ;;  %v1150_v55 = vpop.f32.mrf.mxu3 }
 0x14a   : > { %1316 = vst [vmem:[%s2425_s6 + $0x10] sm:$0xff] %v1298_v59  ;;  %v1251_v23 = vmax.f32 %v1017_v24, %v1127_v31  ;;  %v1252_v40 = vmax.f32 %v1018_v21, %v1150_v55  ;;  %v1084_v3 = vpop.f32.mrf.mxu0  ;;  %v1107_v5 = vpop.f32.mrf.mxu1  ;;  %v1020_v22 = vmax.f32 %v2578_v28, %v962_v39  ;;  %v2579_v21 = vmax.f32 %v2330_v48, %v2394_v19 }
 0x14b   : > { %v1258_v45 = vmax.f32 %v1024_v13, %v1084_v3  ;;  %v1259_v4 = vmax.f32 %v1025_v14, %v1107_v5  ;;  %v1022_v14 = vmax.f32 %v2580_v2, %v2416_v57  ;;  %v2581_v31 = vmax.f32 %v2334_v50, %v2386_v15 }
 0x14c   : > { %v1281_v6 = vadd.f32 %v2414_v54, %v1251_v23  ;;  %v1282_v42 = vadd.f32 %v2414_v54, %v1252_v40  ;;  %v1021_v13 = vmax.f32 %v2579_v21, %v2412_v41  ;;  %v2582_v23 = vmax.f32 %v2336_v51, %v2388_v16 }
 0x14d   : > { %v1288_v43 = vadd.f32 %v2428_v10, %v1258_v45  ;;  %v1289_v63 = vadd.f32 %v2428_v10, %v1259_v4  ;;  %v1028_v55 = vmax.f32 %v2581_v31, %v2410_v38 }
 0x14e   : > { %v1299_v0 = vmax.f32 %v1281_v6, 0.0  ;;  %v1300_v1 = vmax.f32 %v1282_v42, 0.0  ;;  %v1029_v40 = vmax.f32 %v2582_v23, %v2420_v27  ;;  %v2583_v6 = vmax.f32 %v2338_v52, %v2402_v25 }
 0x14f   : > { %v1306_v30 = vmax.f32 %v1288_v43, 0.0  ;;  %v1307_v32 = vmax.f32 %v1289_v63, 0.0 }
 0x150   : > { %1317 = vst [vmem:[%s2425_s6 + $0x18] sm:$0xff] %v1299_v0  ;;  %v1030_v42 = vmax.f32 %v2583_v6, %v2422_v18 }
 0x151   : > { %1318 = vst [vmem:[%s2425_s6 + $0x20] sm:$0xff] %v1300_v1  ;;  %v1130_v29 = vpop.f32.mrf.mxu2  ;;  %v1153_v58 = vpop.f32.mrf.mxu3 }
 0x152   : > { %1324 = vst [vmem:[%s2425_s6 + $0x50] sm:$0x3] %v1306_v30  ;;  %v1260_v59 = vmax.f32 %v1026_v35, %v1130_v29  ;;  %v1261_v44 = vmax.f32 %v1027_v61, %v1153_v58  ;;  %v1173_v11 = vpop.f32.mrf.mxu0  ;;  %v1196_v36 = vpop.f32.mrf.mxu1 }
 0x153   : > { %1325 = vst [vmem:[%s2425_s6 + $0x58] sm:$0x3] %v1307_v32  ;;  %v1253_v49 = vmax.f32 %v1019_v62, %v1173_v11  ;;  %v1254_v12 = vmax.f32 %v1020_v22, %v1196_v36  ;;  %v1372_v62 = vld [vmem:[%s2425_s6 + $0x48] sm:$0xff] (%p1678_p5) }
 0x154   : > { %v1290_v46 = vadd.f32 %v2428_v10, %v1260_v59  ;;  %v1291_v7 = vadd.f32 %v2428_v10, %v1261_v44  ;;  %1373 = vst [vmem:[%s2523_s20 + $0x90] sm:$0xff] (%p1678_p5), %v1372_v62 }
 0x155   : > { %v1283_v47 = vadd.f32 %v2414_v54, %v1253_v49  ;;  %v1284_v8 = vadd.f32 %v2414_v54, %v1254_v12 }
 0x156   : > { %v1308_v34 = vmax.f32 %v1290_v46, 0.0  ;;  %v1309_v37 = vmax.f32 %v1291_v7, 0.0 }
 0x157   : > { %v1301_v39 = vmax.f32 %v1283_v47, 0.0  ;;  %v1302_v24 = vmax.f32 %v1284_v8, 0.0  ;;  %v1360_v18 = vld [vmem:[%s2425_s6 + $0x18] sm:$0xff] (%p1678_p5) }
 0x158   : > { %1326 = vst [vmem:[%s2425_s6 + $0x60] sm:$0x3] %v1308_v34 }
 0x159   : > { %1327 = vst [vmem:[%s2425_s6 + $0x68] sm:$0x3] %v1309_v37  ;;  %v1219_v3 = vpop.f32.mrf.mxu2  ;;  %v1242_v48 = vpop.f32.mrf.mxu3  ;;  %v1374_v28 = vld [vmem:[%s2425_s6 + $0x50] sm:$0xff] (%p1678_p5) }
 0x15a   : > { %1319 = vst [vmem:[%s2425_s6 + $0x28] sm:$0xff] %v1301_v39  ;;  %v1255_v19 = vmax.f32 %v1021_v13, %v1219_v3  ;;  %v1256_v41 = vmax.f32 %v1022_v14, %v1242_v48  ;;  %v1176_v53 = vpop.f32.mrf.mxu0  ;;  %v1199_v20 = vpop.f32.mrf.mxu1  ;;  %v1376_v22 = vld [vmem:[%s2425_s6 + $0x58] sm:$0xff] (%p1678_p5) }
 0x15b   : > { %1320 = vst [vmem:[%s2425_s6 + $0x30] sm:$0xff] %v1302_v24  ;;  %v1262_v57 = vmax.f32 %v1028_v55, %v1176_v53  ;;  %v1263_v50 = vmax.f32 %v1029_v40, %v1199_v20 }
 0x15c   : > { %v1285_v15 = vadd.f32 %v2414_v54, %v1255_v19  ;;  %v1286_v38 = vadd.f32 %v2414_v54, %v1256_v41  ;;  %v2584_v54 = vmax.f32 %v2351_v60, %v2404_v26  ;;  %v1354_v60 = vld [vmem:[%s2425_s6] sm:$0xff] (%p1678_p5)  ;;  %1361 = vst [vmem:[%s2523_s20 + $0x18] sm:$0xff] (%p1678_p5), %v1360_v18 }
 0x15d   : > { %v1292_v51 = vadd.f32 %v2428_v10, %v1262_v57  ;;  %v1293_v16 = vadd.f32 %v2428_v10, %v1263_v50  ;;  %1355 = vst [vmem:[%s2523_s20] sm:$0xff] (%p1678_p5), %v1354_v60  ;;  %v1362_v26 = vld [vmem:[%s2425_s6 + $0x20] sm:$0xff] (%p1678_p5) }
 0x15e   : > { %v1303_v27 = vmax.f32 %v1285_v15, 0.0  ;;  %v1304_v5 = vmax.f32 %v1286_v38, 0.0  ;;  %v1031_v43 = vmax.f32 %v2584_v54, %v2430_v9  ;;  %v1356_v9 = vld [vmem:[%s2425_s6 + $0x8] sm:$0xff] (%p1678_p5)  ;;  %1363 = vst [vmem:[%s2523_s20 + $0x20] sm:$0xff] (%p1678_p5), %v1362_v26 }
 0x15f   : > { %v1310_v45 = vmax.f32 %v1292_v51, 0.0  ;;  %v1311_v4 = vmax.f32 %v1293_v16, 0.0  ;;  %1357 = vst [vmem:[%s2523_s20 + $0x8] sm:$0xff] (%p1678_p5), %v1356_v9  ;;  %v1378_v29 = vld [vmem:[%s2425_s6 + $0x60] sm:$0xff] (%p1678_p5) }
 0x160   : > { %1321 = vst [vmem:[%s2425_s6 + $0x38] sm:$0xff] %v1303_v27  ;;  %v1380_v58 = vld [vmem:[%s2425_s6 + $0x68] sm:$0xff] (%p1678_p5) }
 0x161   : > { %1322 = vst [vmem:[%s2425_s6 + $0x40] sm:$0xff] %v1304_v5  ;;  %v1222_v63 = vpop.f32.mrf.mxu2  ;;  %v1245_v0 = vpop.f32.mrf.mxu3  ;;  %v1364_v35 = vld [vmem:[%s2425_s6 + $0x28] sm:$0xff] (%p1678_p5) }
 0x162   : > { %1328 = vst [vmem:[%s2425_s6 + $0x70] sm:$0x3] %v1310_v45  ;;  %v1264_v1 = vmax.f32 %v1030_v42, %v1222_v63  ;;  %v1265_v30 = vmax.f32 %v1031_v43, %v1245_v0  ;;  %v1366_v56 = vld [vmem:[%s2425_s6 + $0x30] sm:$0xff] (%p1678_p5) }
 0x163   : > { %1329 = vst [vmem:[%s2425_s6 + $0x78] sm:$0x3] %v1311_v4 }
 0x164   : > { %v1294_v32 = vadd.f32 %v2428_v10, %v1264_v1  ;;  %v1295_v33 = vadd.f32 %v2428_v10, %v1265_v30  ;;  %v1358_v10 = vld [vmem:[%s2425_s6 + $0x10] sm:$0xff] (%p1678_p5)  ;;  %1365 = vst [vmem:[%s2523_s20 + $0x28] sm:$0xff] (%p1678_p5), %v1364_v35 }
 0x165   : > { %1338 = sbr.rel (!%p1678_p5) target bundleno = 371 (0x173), region = 59  ;;  %1359 = vst [vmem:[%s2523_s20 + $0x10] sm:$0xff] (%p1678_p5), %v1358_v10 }
 0x166   : > { %v1312_v52 = vmax.f32 %v1294_v32, 0.0  ;;  %v1313_v25 = vmax.f32 %v1295_v33, 0.0  ;;  %1367 = vst [vmem:[%s2523_s20 + $0x30] sm:$0xff] (%p1678_p5), %v1366_v56 }
 0x167   : > { %v1368_v61 = vld [vmem:[%s2425_s6 + $0x38] sm:$0xff] (%p1678_p5)  ;;  %1375 = vst [vmem:[%s2523_s20 + $0x98] sm:$0xff] (%p1678_p5), %v1374_v28 }
 0x168   : > { %1330 = vst [vmem:[%s2425_s6 + $0x80] sm:$0x3] %v1312_v52  ;;  %v1370_v17 = vld [vmem:[%s2425_s6 + $0x40] sm:$0xff] (%p1678_p5) }
 0x169   : > { %1331 = vst [vmem:[%s2425_s6 + $0x88] sm:$0x3] %v1313_v25  ;;  %v1382_v59 = vld [vmem:[%s2425_s6 + $0x70] sm:$0xff] (%p1678_p5) }
 0x16a   : > { %1369 = vst [vmem:[%s2523_s20 + $0x38] sm:$0xff] %v1368_v61  ;;  %v1384_v44 = vld [vmem:[%s2425_s6 + $0x78] sm:$0xff] }
 0x16b   : > { %1371 = vst [vmem:[%s2523_s20 + $0x40] sm:$0xff] %v1370_v17 }
 0x16c   : > { %1377 = vst [vmem:[%s2523_s20 + $0xa0] sm:$0xff] %v1376_v22 }
 0x16d   : > { %1379 = vst [vmem:[%s2523_s20 + $0xa8] sm:$0xff] %v1378_v29 }
 0x16e   : > { %1381 = vst [vmem:[%s2523_s20 + $0xb0] sm:$0xff] %v1380_v58 }
 0x16f   : > { %v1386_v11 = vld [vmem:[%s2425_s6 + $0x80] sm:$0xff]  ;;  %1383 = vst [vmem:[%s2523_s20 + $0xb8] sm:$0xff] %v1382_v59 }
 0x170   : > { %v1388_v36 = vld [vmem:[%s2425_s6 + $0x88] sm:$0xff]  ;;  %1385 = vst [vmem:[%s2523_s20 + $0xc0] sm:$0xff] %v1384_v44 }
 0x171   : > { %1387 = vst [vmem:[%s2523_s20 + $0xc8] sm:$0xff] %v1386_v11 }
 0x172   : > { %1389 = vst [vmem:[%s2523_s20 + $0xd0] sm:$0xff] %v1388_v36 }
 0x173 PF: > { %p10_p10 = scmp.ge.s32.totalorder %s1665_s16, 4   ;;  %s2585_s12 = smov %s1621_s13 }
 0x174   : > { %s2586_s13 = smov %s1676_s19  ;;  %s2587_s14 = smov %s1665_s16 }
 0x175   :  { %12 = sbr.rel (!%p10_p10) target bundleno = 2 (0x2), region = 116 }

// kernel: mnist_net_forward.4
= control target key start
LH: loop header
LB: loop body
LE: loop exit
PB: predicated region body
PF: predicated region fallthrough
CT: control target
= control target key end

     0   :  { %s1074_s12 = smov 0   ;;  %s1076_s13 = smov 0   ;;  %s1686_s0 = inlined_call_operand.vmem [shape: f32[360,256], index: 0, kind: input, shape index: {}]   ;;  %s1687_s1 = inlined_call_operand.vmem [shape: f32[4,20,360], index: 1, kind: input, shape index: {}]   ;;  %s1688_s2 = inlined_call_operand.vmem [shape: f32[20,1], index: 2, kind: input, shape index: {}]   ;;  %s1689_s3 = inlined_call_operand.vmem [shape: f32[20,256], index: 3, kind: output, shape index: {}]  }
   0x1   :  { %s1078_s14 = smov 0  }
   0x2 LB: > { %s951_s15 = sadd.s32 4294967295, %s1051_s14   ;;  %s1091_s16 = sadd.s32 1, %s1051_s14   ;;  %s1051_s14 = sphi %s1078_s14, %s1693_s14   ;;  %s1047_s13 = sphi %s1076_s13, %s1692_s13   ;;  %s1043_s12 = sphi %s1074_s12, %s1691_s12  }
   0x3   : > { %s17_s17 = ssub.s32 %s1051_s14, %s1091_s16  ;;  %s20_s18 = sadd.s32 1, %s1047_s13 }
   0x4   : > { %p18_p0 = scmp.eq.s32.totalorder %s17_s17, 0  ;;  %p27_p1 = scmp.ne.s32.totalorder %s1047_s13, %s1043_s12 }
   0x5   : > { %p28_p2 = scmp.eq.s32.totalorder %s1051_s14, 0  ;;  %p99_p3 = scmp.eq.s32.totalorder %s951_s15, 1 }
   0x6   : > { %s1102_s19 = scalar_select %p18_p0, %s1047_s13, %s20_s18  }
   0x7   : > { %p29_p4 = por %p28_p2, %p27_p1  ;;  %p1104_p5 = por %p99_p3, %p27_p1 }
   0x8   : > { %p954_p6 = scmp.ge.s32.totalorder %s1051_s14, 2 }
   0xa   : > { %127 = sbr.rel (%p954_p6) target bundleno = 64 (0x40), region = 24 }
   0xf   : > { %130 = sbr.rel (!%p29_p4) target bundleno = 64 (0x40), region = 28  ;;  %s132_s21 = sand.u32 (%p29_p4), 1, %s1047_s13  }
  0x10   : > { %s955_s22 = sshll.u32 (%p29_p4), %s1051_s14, 3  ;;  %s999_s23 = smul.u32 (%p29_p4), 360, %s132_s21 }
  0x11   : > { %s1114_s26 = scalar_lea.vmem (%p29_p4), %s1686_s0, %s955_s22 }
  0x12   : > { %v253_v0 = vld [vmem:[%s1114_s26] sm:$0xff] (%p29_p4)  ;;  %v255_v1 = vld [vmem:[%s1114_s26 + $0x10] sm:$0xff] (%p29_p4)  ;;  %s1119_s27 = scalar_lea.vmem (%p29_p4), [#allocation2], %s999_s23 }
  0x13   : > { %v257_v2 = vld [vmem:[%s1114_s26 + $0x20] sm:$0xff] (%p29_p4)  ;;  %254 = vst [vmem:[%s1119_s27] sm:$0xff] (%p29_p4), %v253_v0  ;;  %v259_v3 = vld [vmem:[%s1114_s26 + $0x30] sm:$0xff] (%p29_p4) }
  0x14   : > { %256 = vst [vmem:[%s1119_s27 + $0x8] sm:$0xff] %v255_v1  ;;  %v261_v4 = vld [vmem:[%s1114_s26 + $0x40] sm:$0xff]  ;;  %v263_v5 = vld [vmem:[%s1114_s26 + $0x50] sm:$0xff] }
  0x15   : > { %258 = vst [vmem:[%s1119_s27 + $0x10] sm:$0xff] %v257_v2  ;;  %v265_v6 = vld [vmem:[%s1114_s26 + $0x60] sm:$0xff]  ;;  %v267_v7 = vld [vmem:[%s1114_s26 + $0x70] sm:$0xff] }
  0x16   : > { %260 = vst [vmem:[%s1119_s27 + $0x18] sm:$0xff] %v259_v3  ;;  %v269_v8 = vld [vmem:[%s1114_s26 + $0x80] sm:$0xff]  ;;  %v271_v9 = vld [vmem:[%s1114_s26 + $0x90] sm:$0xff] }
  0x17   : > { %262 = vst [vmem:[%s1119_s27 + $0x20] sm:$0xff] %v261_v4  ;;  %v273_v10 = vld [vmem:[%s1114_s26 + $0xa0] sm:$0xff]  ;;  %v275_v11 = vld [vmem:[%s1114_s26 + $0xb0] sm:$0xff] }
  0x18   : > { %264 = vst [vmem:[%s1119_s27 + $0x28] sm:$0xff] %v263_v5  ;;  %v277_v12 = vld [vmem:[%s1114_s26 + $0xc0] sm:$0xff]  ;;  %v279_v13 = vld [vmem:[%s1114_s26 + $0xd0] sm:$0xff] }
  0x19   : > { %266 = vst [vmem:[%s1119_s27 + $0x30] sm:$0xff] %v265_v6  ;;  %v281_v14 = vld [vmem:[%s1114_s26 + $0xe0] sm:$0xff]  ;;  %v283_v15 = vld [vmem:[%s1114_s26 + $0xf0] sm:$0xff] }
  0x1a   : > { %268 = vst [vmem:[%s1119_s27 + $0x38] sm:$0xff] %v267_v7  ;;  %v285_v16 = vld [vmem:[%s1114_s26 + $0x100] sm:$0xff]  ;;  %v287_v17 = vld [vmem:[%s1114_s26 + $0x110] sm:$0xff] }
  0x1b   : > { %270 = vst [vmem:[%s1119_s27 + $0x40] sm:$0xff] %v269_v8  ;;  %v289_v18 = vld [vmem:[%s1114_s26 + $0x120] sm:$0xff]  ;;  %v291_v19 = vld [vmem:[%s1114_s26 + $0x130] sm:$0xff] }
  0x1c   : > { %272 = vst [vmem:[%s1119_s27 + $0x48] sm:$0xff] %v271_v9  ;;  %v293_v20 = vld [vmem:[%s1114_s26 + $0x140] sm:$0xff]  ;;  %v295_v21 = vld [vmem:[%s1114_s26 + $0x150] sm:$0xff] }
  0x1d   : > { %274 = vst [vmem:[%s1119_s27 + $0x50] sm:$0xff] %v273_v10  ;;  %v297_v22 = vld [vmem:[%s1114_s26 + $0x160] sm:$0xff]  ;;  %v299_v23 = vld [vmem:[%s1114_s26 + $0x170] sm:$0xff] }
  0x1e   : > { %276 = vst [vmem:[%s1119_s27 + $0x58] sm:$0xff] %v275_v11  ;;  %v301_v24 = vld [vmem:[%s1114_s26 + $0x180] sm:$0xff]  ;;  %v303_v25 = vld [vmem:[%s1114_s26 + $0x190] sm:$0xff] }
  0x1f   : > { %278 = vst [vmem:[%s1119_s27 + $0x60] sm:$0xff] %v277_v12  ;;  %v305_v26 = vld [vmem:[%s1114_s26 + $0x1a0] sm:$0xff]  ;;  %v307_v27 = vld [vmem:[%s1114_s26 + $0x1b0] sm:$0xff] }
  0x20   : > { %280 = vst [vmem:[%s1119_s27 + $0x68] sm:$0xff] %v279_v13  ;;  %v309_v28 = vld [vmem:[%s1114_s26 + $0x1c0] sm:$0xff]  ;;  %v311_v29 = vld [vmem:[%s1114_s26 + $0x1d0] sm:$0xff] }
  0x21   : > { %282 = vst [vmem:[%s1119_s27 + $0x70] sm:$0xff] %v281_v14  ;;  %v313_v30 = vld [vmem:[%s1114_s26 + $0x1e0] sm:$0xff]  ;;  %v315_v31 = vld [vmem:[%s1114_s26 + $0x1f0] sm:$0xff] }
  0x22   : > { %284 = vst [vmem:[%s1119_s27 + $0x78] sm:$0xff] %v283_v15  ;;  %v317_v32 = vld [vmem:[%s1114_s26 + $0x200] sm:$0xff]  ;;  %v319_v33 = vld [vmem:[%s1114_s26 + $0x210] sm:$0xff] }
  0x23   : > { %286 = vst [vmem:[%s1119_s27 + $0x80] sm:$0xff] %v285_v16  ;;  %v321_v34 = vld [vmem:[%s1114_s26 + $0x220] sm:$0xff]  ;;  %v323_v35 = vld [vmem:[%s1114_s26 + $0x230] sm:$0xff] }
  0x24   : > { %288 = vst [vmem:[%s1119_s27 + $0x88] sm:$0xff] %v287_v17  ;;  %v325_v36 = vld [vmem:[%s1114_s26 + $0x240] sm:$0xff]  ;;  %v327_v37 = vld [vmem:[%s1114_s26 + $0x250] sm:$0xff] }
  0x25   : > { %290 = vst [vmem:[%s1119_s27 + $0x90] sm:$0xff] %v289_v18  ;;  %v329_v38 = vld [vmem:[%s1114_s26 + $0x260] sm:$0xff]  ;;  %v331_v39 = vld [vmem:[%s1114_s26 + $0x270] sm:$0xff] }
  0x26   : > { %292 = vst [vmem:[%s1119_s27 + $0x98] sm:$0xff] %v291_v19  ;;  %v333_v40 = vld [vmem:[%s1114_s26 + $0x280] sm:$0xff]  ;;  %v335_v41 = vld [vmem:[%s1114_s26 + $0x290] sm:$0xff] }
  0x27   : > { %294 = vst [vmem:[%s1119_s27 + $0xa0] sm:$0xff] %v293_v20  ;;  %v337_v42 = vld [vmem:[%s1114_s26 + $0x2a0] sm:$0xff]  ;;  %v339_v43 = vld [vmem:[%s1114_s26 + $0x2b0] sm:$0xff] }
  0x28   : > { %296 = vst [vmem:[%s1119_s27 + $0xa8] sm:$0xff] %v295_v21  ;;  %v341_v44 = vld [vmem:[%s1114_s26 + $0x2c0] sm:$0xff] }
  0x29   : > { %298 = vst [vmem:[%s1119_s27 + $0xb0] sm:$0xff] %v297_v22 }
  0x2a   : > { %300 = vst [vmem:[%s1119_s27 + $0xb8] sm:$0xff] %v299_v23 }
  0x2b   : > { %302 = vst [vmem:[%s1119_s27 + $0xc0] sm:$0xff] %v301_v24 }
  0x2c   : > { %304 = vst [vmem:[%s1119_s27 + $0xc8] sm:$0xff] %v303_v25 }
  0x2d   : > { %306 = vst [vmem:[%s1119_s27 + $0xd0] sm:$0xff] %v305_v26 }
  0x2e   : > { %308 = vst [vmem:[%s1119_s27 + $0xd8] sm:$0xff] %v307_v27 }
  0x2f   : > { %310 = vst [vmem:[%s1119_s27 + $0xe0] sm:$0xff] %v309_v28 }
  0x30   : > { %312 = vst [vmem:[%s1119_s27 + $0xe8] sm:$0xff] %v311_v29 }
  0x31   : > { %314 = vst [vmem:[%s1119_s27 + $0xf0] sm:$0xff] %v313_v30 }
  0x32   : > { %316 = vst [vmem:[%s1119_s27 + $0xf8] sm:$0xff] %v315_v31 }
  0x33   : > { %318 = vst [vmem:[%s1119_s27 + $0x100] sm:$0xff] %v317_v32 }
  0x34   : > { %320 = vst [vmem:[%s1119_s27 + $0x108] sm:$0xff] %v319_v33 }
  0x35   : > { %322 = vst [vmem:[%s1119_s27 + $0x110] sm:$0xff] %v321_v34 }
  0x36   : > { %324 = vst [vmem:[%s1119_s27 + $0x118] sm:$0xff] %v323_v35 }
  0x37   : > { %326 = vst [vmem:[%s1119_s27 + $0x120] sm:$0xff] %v325_v36 }
  0x38   : > { %328 = vst [vmem:[%s1119_s27 + $0x128] sm:$0xff] %v327_v37 }
  0x39   : > { %330 = vst [vmem:[%s1119_s27 + $0x130] sm:$0xff] %v329_v38 }
  0x3a   : > { %332 = vst [vmem:[%s1119_s27 + $0x138] sm:$0xff] %v331_v39 }
  0x3b   : > { %334 = vst [vmem:[%s1119_s27 + $0x140] sm:$0xff] %v333_v40 }
  0x3c   : > { %336 = vst [vmem:[%s1119_s27 + $0x148] sm:$0xff] %v335_v41 }
  0x3d   : > { %338 = vst [vmem:[%s1119_s27 + $0x150] sm:$0xff] %v337_v42 }
  0x3e   : > { %340 = vst [vmem:[%s1119_s27 + $0x158] sm:$0xff] %v339_v43 }
  0x3f   : > { %342 = vst [vmem:[%s1119_s27 + $0x160] sm:$0xff] %v341_v44 }
  0x40 PF: > { %p956_p7 = scmp.ge.s32.totalorder %s1051_s14, 1  ;;  %p347_p8 = scmp.lt.s32.totalorder %s1051_s14, 3 }
  0x42   : > { %p348_p9 = pnand %p956_p7, %p347_p8 }
  0x43   : > { %s354_s28 = sand.u32 (!%p348_p9), 1, %s1043_s12  }
  0x44   : > { %351 = sbr.rel (%p348_p9) target bundleno = 342 (0x156), region = 66 }
  0x45   : > { %s1000_s29 = smul.u32 (!%p348_p9), 360, %s354_s28 }
  0x46   : > { %s1001_s6 = smul.u32 (!%p348_p9), 24, %s354_s28 }
  0x47   : > { %s1213_s30 = scalar_lea.vmem (!%p348_p9), [#allocation2], %s1000_s29 }
  0x48   : > { %s1661_s7 = scalar_lea.vmem (!%p348_p9), [#allocation3], %s1001_s6 }
  0x49   : > { %v1216_v45 = vld [vmem:[%s1213_s30 + $0x78] sm:$0xff]  ;;  %v1222_v47 = vld [vmem:[%s1213_s30 + $0x160] sm:$0xff]  ;;  %v1227_v48 = vld [vmem:[%s1213_s30 + $0x70] sm:$0xff]  ;;  %vm430_vm0 = vcmask 850944   ;;  %s996_s12 = sshll.u32 (%p1104_p5), %s951_s15, 3 }
  0x4a   : > { %v1219_v46 = vld [vmem:[%s1213_s30 + $0xf8] sm:$0xff]  ;;  %440 = vmatpush.msra.mxu0 %v1216_v45  ;;  %v1230_v49 = vld [vmem:[%s1213_s30 + $0xf0] sm:$0xff]  ;;  %495 = vmatpush.msra.mxu2 %v1222_v47  ;;  %v1238_v51 = vld [vmem:[%s1213_s30 + $0x68] sm:$0xff]  ;;  %s853_s9 = scalar_lea.vmem (%p1104_p5), %s1689_s3, %s996_s12 }
  0x4b   : > { %466 = vmatpush.msra.mxu1 %v1219_v46  ;;  %v1233_v50 = vld [vmem:[%s1213_s30 + $0x158] sm:$0xff]  ;;  %537 = vmatpush.msra.mxu3 %v1216_v45  ;;  %v1241_v52 = vld [vmem:[%s1213_s30 + $0xe8] sm:$0xff]  ;;  %v1246_v53 = vld [vmem:[%s1213_s30 + $0x150] sm:$0xff] }
  0x4c   : > { %441 = vmatpush.msra.mxu0 %v1227_v48  ;;  %496 = vmatpush.msra.mxu2 %v1233_v50  ;;  %v1251_v54 = vld [vmem:[%s1213_s30 + $0x60] sm:$0xff]  ;;  %v1259_v56 = vld [vmem:[%s1213_s30 + $0x148] sm:$0xff]  ;;  %v1264_v57 = vld [vmem:[%s1213_s30 + $0x58] sm:$0xff] }
  0x4d   : > { %467 = vmatpush.msra.mxu1 %v1230_v49  ;;  %538 = vmatpush.msra.mxu3 %v1227_v48  ;;  %v1254_v55 = vld [vmem:[%s1213_s30 + $0xe0] sm:$0xff]  ;;  %v1267_v58 = vld [vmem:[%s1213_s30 + $0xd8] sm:$0xff]  ;;  %v1277_v60 = vld [vmem:[%s1213_s30 + $0x50] sm:$0xff] }
  0x4e   : > { %442 = vmatpush.msra.mxu0 %v1238_v51  ;;  %497 = vmatpush.msra.mxu2 %v1246_v53  ;;  %v1272_v59 = vld [vmem:[%s1213_s30 + $0x140] sm:$0xff]  ;;  %v1280_v61 = vld [vmem:[%s1213_s30 + $0xd0] sm:$0xff]  ;;  %v1285_v62 = vld [vmem:[%s1213_s30 + $0x138] sm:$0xff] }
  0x4f   : > { %468 = vmatpush.msra.mxu1 %v1241_v52  ;;  %539 = vmatpush.msra.mxu3 %v1238_v51  ;;  %v1290_v63 = vld [vmem:[%s1213_s30 + $0x48] sm:$0xff]  ;;  %v1298_v1 = vld [vmem:[%s1213_s30 + $0x130] sm:$0xff]  ;;  %v1303_v2 = vld [vmem:[%s1213_s30 + $0x40] sm:$0xff] }
  0x50   : > { %443 = vmatpush.msra.mxu0 %v1251_v54  ;;  %498 = vmatpush.msra.mxu2 %v1259_v56  ;;  %v1293_v0 = vld [vmem:[%s1213_s30 + $0xc8] sm:$0xff]  ;;  %v1306_v3 = vld [vmem:[%s1213_s30 + $0xc0] sm:$0xff]  ;;  %v1316_v5 = vld [vmem:[%s1213_s30 + $0x38] sm:$0xff] }
  0x51   : > { %469 = vmatpush.msra.mxu1 %v1254_v55  ;;  %540 = vmatpush.msra.mxu3 %v1251_v54  ;;  %v1311_v4 = vld [vmem:[%s1213_s30 + $0x128] sm:$0xff]  ;;  %v1319_v6 = vld [vmem:[%s1213_s30 + $0xb8] sm:$0xff]  ;;  %v1324_v7 = vld [vmem:[%s1213_s30 + $0x120] sm:$0xff] }
  0x52   : > { %444 = vmatpush.msra.mxu0 %v1264_v57  ;;  %499 = vmatpush.msra.mxu2 %v1272_v59  ;;  %v1329_v8 = vld [vmem:[%s1213_s30 + $0x30] sm:$0xff]  ;;  %v1337_v10 = vld [vmem:[%s1213_s30 + $0x118] sm:$0xff]  ;;  %v1342_v11 = vld [vmem:[%s1213_s30 + $0x28] sm:$0xff] }
  0x53   : > { %470 = vmatpush.msra.mxu1 %v1267_v58  ;;  %541 = vmatpush.msra.mxu3 %v1264_v57  ;;  %v1332_v9 = vld [vmem:[%s1213_s30 + $0xb0] sm:$0xff]  ;;  %v1345_v12 = vld [vmem:[%s1213_s30 + $0xa8] sm:$0xff]  ;;  %v1355_v14 = vld [vmem:[%s1213_s30 + $0x20] sm:$0xff] }
  0x54   : > { %445 = vmatpush.msra.mxu0 %v1277_v60  ;;  %500 = vmatpush.msra.mxu2 %v1285_v62  ;;  %v1350_v13 = vld [vmem:[%s1213_s30 + $0x110] sm:$0xff]  ;;  %v1358_v15 = vld [vmem:[%s1213_s30 + $0xa0] sm:$0xff]  ;;  %v1363_v16 = vld [vmem:[%s1213_s30 + $0x108] sm:$0xff] }
  0x55   : > { %471 = vmatpush.msra.mxu1 %v1280_v61  ;;  %542 = vmatpush.msra.mxu3 %v1277_v60  ;;  %v1368_v17 = vld [vmem:[%s1213_s30 + $0x18] sm:$0xff]  ;;  %v1376_v19 = vld [vmem:[%s1213_s30 + $0x100] sm:$0xff]  ;;  %v1381_v20 = vld [vmem:[%s1213_s30 + $0x10] sm:$0xff] }
  0x56   : > { %446 = vmatpush.msra.mxu0 %v1290_v63  ;;  %501 = vmatpush.msra.mxu2 %v1298_v1  ;;  %v1371_v18 = vld [vmem:[%s1213_s30 + $0x98] sm:$0xff]  ;;  %v1386_v21 = vld [vmem:[%s1213_s30 + $0x90] sm:$0xff]  ;;  %v1391_v22 = vld [vmem:[%s1213_s30 + $0x8] sm:$0xff] }
  0x57   : > { %472 = vmatpush.msra.mxu1 %v1293_v0  ;;  %543 = vmatpush.msra.mxu3 %v1290_v63  ;;  %v1396_v23 = vld [vmem:[%s1213_s30 + $0x88] sm:$0xff]  ;;  %v1401_v24 = vld [vmem:[%s1213_s30] sm:$0xff]  ;;  %v424_v30 = vld [vmem:[%s1687_s1 + $0x18] sm:$0xff] }
  0x58   : > { %447 = vmatpush.msra.mxu0 %v1303_v2  ;;  %502 = vmatpush.msra.mxu2 %v1311_v4  ;;  %v1406_v25 = vld [vmem:[%s1213_s30 + $0x80] sm:$0xff]  ;;  %v423_v26 = vld [vmem:[%s1687_s1 + $0x10] sm:$0xff]  ;;  %v966_v36 = vld [vmem:[%s1687_s1 + $0x78] sm:$0xf] }
  0x59   : > { %473 = vmatpush.msra.mxu1 %v1306_v3  ;;  %544 = vmatpush.msra.mxu3 %v1303_v2  ;;  %v421_v27 = vld [vmem:[%s1687_s1] sm:$0xff]  ;;  %v960_v28 = vld [vmem:[%s1687_s1 + $0x48] sm:$0xff]  ;;  %v427_v34 = vld [vmem:[%s1687_s1 + $0x30] sm:$0xf] }
  0x5a   : > { %448 = vmatpush.msra.mxu0 %v1316_v5  ;;  %503 = vmatpush.msra.mxu2 %v1324_v7  ;;  %v426_v29 = vld [vmem:[%s1687_s1 + $0x28] sm:$0xff]  ;;  %v963_v32 = vld [vmem:[%s1687_s1 + $0x60] sm:$0xff]  ;;  %v961_v37 = vld [vmem:[%s1687_s1 + $0x50] sm:$0xff] }
  0x5b   : > { %474 = vmatpush.msra.mxu1 %v1319_v6  ;;  %545 = vmatpush.msra.mxu3 %v1316_v5  ;;  %v422_v31 = vld [vmem:[%s1687_s1 + $0x8] sm:$0xff]  ;;  %v429_v33 = vld [vmem:[%s1687_s1 + $0x40] sm:$0xf]  ;;  %v962_v38 = vld [vmem:[%s1687_s1 + $0x58] sm:$0xff] }
  0x5c   : > { %449 = vmatpush.msra.mxu0 %v1329_v8  ;;  %504 = vmatpush.msra.mxu2 %v1337_v10  ;;  %v425_v35 = vld [vmem:[%s1687_s1 + $0x20] sm:$0xff]  ;;  %v428_v39 = vld [vmem:[%s1687_s1 + $0x38] sm:$0xf]  ;;  %v964_v41 = vld [vmem:[%s1687_s1 + $0x68] sm:$0xff] }
  0x5d   : > { %475 = vmatpush.msra.mxu1 %v1332_v9  ;;  %546 = vmatpush.msra.mxu3 %v1329_v8  ;;  %v973_v40 = vld [vmem:[%s1687_s1 + $0x98] sm:$0xff]  ;;  %v965_v42 = vld [vmem:[%s1687_s1 + $0x70] sm:$0xff]  ;;  %v967_v44 = vld [vmem:[%s1687_s1 + $0x80] sm:$0xf] }
  0x5e   : > { %450 = vmatpush.msra.mxu0 %v1342_v11  ;;  %505 = vmatpush.msra.mxu2 %v1350_v13  ;;  %v972_v43 = vld [vmem:[%s1687_s1 + $0x90] sm:$0xff] }
  0x5f   : > { %476 = vmatpush.msra.mxu1 %v1345_v12  ;;  %547 = vmatpush.msra.mxu3 %v1342_v11 }
  0x60   : > { %451 = vmatpush.msra.mxu0 %v1355_v14  ;;  %506 = vmatpush.msra.mxu2 %v1363_v16 }
  0x61   : > { %477 = vmatpush.msra.mxu1 %v1358_v15  ;;  %548 = vmatpush.msra.mxu3 %v1355_v14 }
  0x62   : > { %452 = vmatpush.msra.mxu0 %v1368_v17  ;;  %507 = vmatpush.msra.mxu2 %v1376_v19 }
  0x63   : > { %478 = vmatpush.msra.mxu1 %v1371_v18  ;;  %549 = vmatpush.msra.mxu3 %v1368_v17 }
  0x64   : > { %563 = vmatpush.msrb.mxu2 %v1219_v46  ;;  %453 = vmatpush.msra.mxu0 %v1381_v20 }
  0x65   : > { %479 = vmatpush.msra.mxu1 %v1386_v21  ;;  %550 = vmatpush.msra.mxu3 %v1381_v20 }
  0x66   : > { %564 = vmatpush.msrb.mxu2 %v1230_v49  ;;  %454 = vmatpush.msra.mxu0 %v1391_v22 }
  0x67   : > { %480 = vmatpush.msra.mxu1 %v1396_v23  ;;  %551 = vmatpush.msra.mxu3 %v1391_v22 }
  0x68   : > { %565 = vmatpush.msrb.mxu2 %v1241_v52  ;;  %455 = vmatpush.msra.mxu0 %v1401_v24 }
  0x69   : > { %481 = vmatpush.msra.mxu1 %v1406_v25  ;;  %552 = vmatpush.msra.mxu3 %v1401_v24 }
  0x6a   : > { %566 = vmatpush.msrb.mxu2 %v1254_v55  ;;  %592 = vmatpush.msrb.mxu0 %v1222_v47 }
  0x6b   : > { %637 = vmatpush.msrb.mxu1 %v1216_v45  ;;  %957 = vmatmul.msk.f32.vlgmr.msra.gmra.mxu2 %vm430_vm0, %v423_v26 }
  0x6c   : > { %663 = vmatpush.msrb.mxu3 %v1219_v46  ;;  %456 = vmatmul.f32.vlgmr.msra.gmra.mxu0 %v421_v27 }
  0x6d   : > { %567 = vmatpush.msrb.mxu2 %v1267_v58  ;;  %593 = vmatpush.msrb.mxu0 %v1233_v50 }
  0x6e   : > { %638 = vmatpush.msrb.mxu1 %v1227_v48  ;;  %664 = vmatpush.msrb.mxu3 %v1230_v49 }
  0x6f   : > { %568 = vmatpush.msrb.mxu2 %v1280_v61  ;;  %594 = vmatpush.msrb.mxu0 %v1246_v53 }
  0x70   : > { %639 = vmatpush.msrb.mxu1 %v1238_v51  ;;  %665 = vmatpush.msrb.mxu3 %v1241_v52 }
  0x71   : > { %569 = vmatpush.msrb.mxu2 %v1293_v0  ;;  %595 = vmatpush.msrb.mxu0 %v1259_v56 }
  0x72   : > { %640 = vmatpush.msrb.mxu1 %v1251_v54  ;;  %666 = vmatpush.msrb.mxu3 %v1254_v55 }
  0x73   : > { %553 = vmatmul.f32.vlgmr.msra.gmra.mxu3 %v960_v28  ;;  %570 = vmatpush.msrb.mxu2 %v1306_v3 }
  0x74   : > { %596 = vmatpush.msrb.mxu0 %v1272_v59  ;;  %641 = vmatpush.msrb.mxu1 %v1264_v57 }
  0x75   : > { %958 = vmatmul.msk.f32.gmra.mxu2 %vm430_vm0, %v426_v29  ;;  %667 = vmatpush.msrb.mxu3 %v1267_v58 }
  0x76   : > { %459 = vmatmul.f32.gmra.mxu0 %v424_v30  ;;  %571 = vmatpush.msrb.mxu2 %v1319_v6 }
  0x77   : > { %597 = vmatpush.msrb.mxu0 %v1285_v62  ;;  %642 = vmatpush.msrb.mxu1 %v1277_v60 }
  0x78   : > { %668 = vmatpush.msrb.mxu3 %v1280_v61  ;;  %482 = vmatmul.f32.vlgmr.msra.gmra.mxu1 %v422_v31 }
  0x79   : > { %572 = vmatpush.msrb.mxu2 %v1332_v9  ;;  %598 = vmatpush.msrb.mxu0 %v1298_v1 }
  0x7a   : > { %643 = vmatpush.msrb.mxu1 %v1290_v63  ;;  %669 = vmatpush.msrb.mxu3 %v1293_v0 }
  0x7b   : > { %573 = vmatpush.msrb.mxu2 %v1345_v12  ;;  %599 = vmatpush.msrb.mxu0 %v1311_v4 }
  0x7c   : > { %644 = vmatpush.msrb.mxu1 %v1303_v2  ;;  %670 = vmatpush.msrb.mxu3 %v1306_v3 }
  0x7d   : > { %556 = vmatmul.f32.gmra.mxu3 %v963_v32  ;;  %574 = vmatpush.msrb.mxu2 %v1358_v15 }
  0x7e   : > { %600 = vmatpush.msrb.mxu0 %v1324_v7  ;;  %645 = vmatpush.msrb.mxu1 %v1316_v5 }
  0x7f   : > { %959 = vmatmul.msk.f32.gmra.mxu2 %vm430_vm0, %v429_v33  ;;  %671 = vmatpush.msrb.mxu3 %v1319_v6 }
  0x80   : > { %462 = vmatmul.f32.gmra.mxu0 %v427_v34  ;;  %575 = vmatpush.msrb.mxu2 %v1371_v18 }
  0x81   : > { %601 = vmatpush.msrb.mxu0 %v1337_v10  ;;  %646 = vmatpush.msrb.mxu1 %v1329_v8 }
  0x82   : > { %672 = vmatpush.msrb.mxu3 %v1332_v9  ;;  %485 = vmatmul.f32.gmra.mxu1 %v425_v35 }
  0x83   : > { %576 = vmatpush.msrb.mxu2 %v1386_v21  ;;  %602 = vmatpush.msrb.mxu0 %v1350_v13 }
  0x84   : > { %647 = vmatpush.msrb.mxu1 %v1342_v11  ;;  %673 = vmatpush.msrb.mxu3 %v1345_v12 }
  0x85   : > { %577 = vmatpush.msrb.mxu2 %v1396_v23  ;;  %603 = vmatpush.msrb.mxu0 %v1363_v16 }
  0x86   : > { %648 = vmatpush.msrb.mxu1 %v1355_v14  ;;  %674 = vmatpush.msrb.mxu3 %v1358_v15 }
  0x87   : > { %559 = vmatmul.f32.gmra.mxu3 %v966_v36  ;;  %578 = vmatpush.msrb.mxu2 %v1406_v25 }
  0x88   : > { %604 = vmatpush.msrb.mxu0 %v1376_v19  ;;  %649 = vmatpush.msrb.mxu1 %v1368_v17 }
  0x89   : > { %579 = vmatmul.f32.vlgmr.msrb.gmra.mxu2 %v961_v37  ;;  %675 = vmatpush.msrb.mxu3 %v1371_v18 }
  0x8a   : > { %692 = vmatpush.msra.mxu0 %v1222_v47  ;;  %737 = vmatpush.msra.mxu2 %v1216_v45  ;;  %v976_v45 = vld [vmem:[%s1687_s1 + $0xb0] sm:$0xff] }
  0x8b   : > { %969 = vmatmul.msk.f32.vlgmr.msrb.gmra.mxu0 %vm430_vm0, %v962_v38  ;;  %650 = vmatpush.msrb.mxu1 %v1381_v20 }
  0x8c   : > { %676 = vmatpush.msrb.mxu3 %v1386_v21  ;;  %693 = vmatpush.msra.mxu0 %v1233_v50 }
  0x8d   : > { %738 = vmatpush.msra.mxu2 %v1227_v48  ;;  %488 = vmatmul.f32.gmra.mxu1 %v428_v39  ;;  %v979_v48 = vld [vmem:[%s1687_s1 + $0xc8] sm:$0xf] }
  0x8e   : > { %651 = vmatpush.msrb.mxu1 %v1391_v22  ;;  %677 = vmatpush.msrb.mxu3 %v1396_v23 }
  0x8f   : > { %694 = vmatpush.msra.mxu0 %v1246_v53  ;;  %739 = vmatpush.msra.mxu2 %v1238_v51  ;;  %v1053_v51 = vmov 0  }
  0x90   : > { %652 = vmatpush.msrb.mxu1 %v1401_v24  ;;  %678 = vmatpush.msrb.mxu3 %v1406_v25 }
  0x91   : > { %695 = vmatpush.msra.mxu0 %v1259_v56  ;;  %740 = vmatpush.msra.mxu2 %v1251_v54  ;;  %v977_v54 = vld [vmem:[%s1687_s1 + $0xb8] sm:$0xff] }
  0x92   : > { %763 = vmatpush.msra.mxu1 %v1219_v46  ;;  %679 = vmatmul.f32.vlgmr.msrb.gmra.mxu3 %v973_v40  ;;  %v968_v46 = vld [vmem:[%s1687_s1 + $0x88] sm:$0xf] }
  0x93   : > { %582 = vmatmul.f32.gmra.mxu2 %v964_v41  ;;  %696 = vmatpush.msra.mxu0 %v1272_v59 }
  0x94   : > { %741 = vmatpush.msra.mxu2 %v1264_v57  ;;  %764 = vmatpush.msra.mxu1 %v1230_v49  ;;  %v974_v49 = vld [vmem:[%s1687_s1 + $0xa0] sm:$0xff] }
  0x95   : > { %792 = vmatpush.msra.mxu3 %v1222_v47  ;;  %970 = vmatmul.msk.f32.gmra.mxu0 %vm430_vm0, %v965_v42  ;;  %v975_v47 = vld [vmem:[%s1687_s1 + $0xa8] sm:$0xff]  ;;  %v985_v57 = vld [vmem:[%s1687_s1 + $0xe0] sm:$0xff] }
  0x96   : > { %697 = vmatpush.msra.mxu0 %v1285_v62  ;;  %742 = vmatpush.msra.mxu2 %v1277_v60  ;;  %v980_v60 = vld [vmem:[%s1687_s1 + $0xd0] sm:$0xf] }
  0x97   : > { %765 = vmatpush.msra.mxu1 %v1241_v52  ;;  %793 = vmatpush.msra.mxu3 %v1233_v50  ;;  %v978_v50 = vld [vmem:[%s1687_s1 + $0xc0] sm:$0xf]  ;;  %v984_v52 = vld [vmem:[%s1687_s1 + $0xd8] sm:$0xff] }
  0x98   : > { %698 = vmatpush.msra.mxu0 %v1298_v1  ;;  %743 = vmatpush.msra.mxu2 %v1290_v63  ;;  %v990_v63 = vld [vmem:[%s1687_s1 + $0x108] sm:$0xf] }
  0x99   : > { %766 = vmatpush.msra.mxu1 %v1254_v55  ;;  %794 = vmatpush.msra.mxu3 %v1246_v53  ;;  %v818_v53 = vld [vmem:[%s1688_s2] sm:$0xff]  ;;  %v986_v55 = vld [vmem:[%s1687_s1 + $0xe8] sm:$0xff] }
  0x9a   : > { %653 = vmatmul.f32.vlgmr.msrb.gmra.mxu1 %v972_v43  ;;  %699 = vmatpush.msra.mxu0 %v1311_v4 }
  0x9b   : > { %744 = vmatpush.msra.mxu2 %v1303_v2  ;;  %767 = vmatpush.msra.mxu1 %v1267_v58  ;;  %v987_v58 = vld [vmem:[%s1687_s1 + $0xf0] sm:$0xff] }
  0x9c   : > { %795 = vmatpush.msra.mxu3 %v1259_v56  ;;  %585 = vmatmul.f32.gmra.mxu2 %v967_v44  ;;  %v820_v56 = vld [vmem:[%s1688_s2 + $0x10] sm:$0xf] }
  0x9d   : > { %682 = vmatmul.f32.gmra.mxu3 %v976_v45  ;;  %700 = vmatpush.msra.mxu0 %v1324_v7 }
  0x9e   : > { %745 = vmatpush.msra.mxu2 %v1316_v5  ;;  %768 = vmatpush.msra.mxu1 %v1280_v61  ;;  %v989_v61 = vld [vmem:[%s1687_s1 + $0x100] sm:$0xff] }
  0x9f   : > { %796 = vmatpush.msra.mxu3 %v1272_v59  ;;  %971 = vmatmul.msk.f32.gmra.mxu0 %vm430_vm0, %v968_v46  ;;  %v819_v59 = vld [vmem:[%s1688_s2 + $0x8] sm:$0xff] }
  0xa0   : > { %701 = vmatpush.msra.mxu0 %v1337_v10  ;;  %746 = vmatpush.msra.mxu2 %v1329_v8 }
  0xa1   : > { %769 = vmatpush.msra.mxu1 %v1293_v0  ;;  %797 = vmatpush.msra.mxu3 %v1285_v62  ;;  %v988_v62 = vld [vmem:[%s1687_s1 + $0xf8] sm:$0xff] }
  0xa2   : > { %702 = vmatpush.msra.mxu0 %v1350_v13  ;;  %747 = vmatpush.msra.mxu2 %v1342_v11  ;;  %v992_v0 = vld [vmem:[%s1687_s1 + $0x118] sm:$0xf] }
  0xa3   : > { %770 = vmatpush.msra.mxu1 %v1306_v3  ;;  %798 = vmatpush.msra.mxu3 %v1298_v1  ;;  %v991_v1 = vld [vmem:[%s1687_s1 + $0x110] sm:$0xf] }
  0xa4   : > { %656 = vmatmul.f32.gmra.mxu1 %v975_v47  ;;  %703 = vmatpush.msra.mxu0 %v1363_v16 }
  0xa5   : > { %748 = vmatpush.msra.mxu2 %v1355_v14  ;;  %771 = vmatpush.msra.mxu1 %v1319_v6 }
  0xa6   : > { %799 = vmatpush.msra.mxu3 %v1311_v4  ;;  %704 = vmatpush.msra.mxu0 %v1376_v19 }
  0xa7   : > { %685 = vmatmul.f32.gmra.mxu3 %v979_v48  ;;  %749 = vmatpush.msra.mxu2 %v1368_v17 }
  0xa8   : > { %772 = vmatpush.msra.mxu1 %v1332_v9  ;;  %800 = vmatpush.msra.mxu3 %v1324_v7 }
  0xa9   : > { %981 = vmatmul.msk.f32.vlgmr.msra.gmra.mxu0 %vm430_vm0, %v974_v49  ;;  %750 = vmatpush.msra.mxu2 %v1381_v20 }
  0xaa   : > { %773 = vmatpush.msra.mxu1 %v1345_v12  ;;  %801 = vmatpush.msra.mxu3 %v1337_v10 }
  0xab   : > { %751 = vmatpush.msra.mxu2 %v1391_v22  ;;  %1027 = vset.pattern.permute.xlu0 %v1053_v51 }
  0xac   : > { %774 = vmatpush.msra.mxu1 %v1358_v15  ;;  %802 = vmatpush.msra.mxu3 %v1350_v13 }
  0xad   : > { %659 = vmatmul.f32.gmra.mxu1 %v978_v50  ;;  %752 = vmatpush.msra.mxu2 %v1401_v24 }
  0xae   : > { %775 = vmatpush.msra.mxu1 %v1371_v18  ;;  %803 = vmatpush.msra.mxu3 %v1363_v16 }
  0xaf   : > { %753 = vmatmul.f32.vlgmr.msra.gmra.mxu2 %v984_v52  ;;  %823 = vperm.xlu0 %1027, %v818_v53  }
  0xb0   : > { %776 = vmatpush.msra.mxu1 %v1386_v21  ;;  %804 = vmatpush.msra.mxu3 %v1376_v19 }
  0xb1   : > { %982 = vmatmul.msk.f32.gmra.mxu0 %vm430_vm0, %v977_v54  ;;  %993 = vmatmul.msk.f32.vlgmr.msra.gmra.mxu3 %vm430_vm0, %v986_v55 }
  0xb2   : > { %777 = vmatpush.msra.mxu1 %v1396_v23  ;;  %1028 = vset.pattern.permute.xlu1 %v1053_v51 }
  0xb3   : > { %833 = vperm.xlu1 %1028, %v820_v56  }
  0xb4   : > { %778 = vmatpush.msra.mxu1 %v1406_v25 }
  0xb5   : > { %779 = vmatmul.f32.vlgmr.msra.gmra.mxu1 %v985_v57 }
  0xb7   : > { %756 = vmatmul.f32.gmra.mxu2 %v987_v58  ;;  %828 = vperm.xlu0 %1027, %v819_v59  }
  0xb9   : > { %983 = vmatmul.msk.f32.gmra.mxu0 %vm430_vm0, %v980_v60  ;;  %994 = vmatmul.msk.f32.gmra.mxu3 %vm430_vm0, %v989_v61 }
  0xbd   : > { %782 = vmatmul.f32.gmra.mxu1 %v988_v62 }
  0xbf   : > { %759 = vmatmul.f32.gmra.mxu2 %v990_v63 }
  0xc1   : > { %995 = vmatmul.msk.f32.gmra.mxu3 %vm430_vm0, %v992_v0 }
  0xc5   : > { %785 = vmatmul.f32.gmra.mxu1 %v991_v1 }
  0xe9   : > { %v457_v2 = vpop.f32.mrf.mxu0 }
  0xee   : > { %v509_v3 = vpop.f32.mrf.mxu2 }
  0xf3   : > { %v460_v4 = vpop.f32.mrf.mxu0 }
  0xf5   : > { %v483_v6 = vpop.f32.mrf.mxu1 }
  0xf6   : > { %v554_v5 = vpop.f32.mrf.mxu3  ;;  %v484_v28 = vadd.f32 %v483_v6, %v457_v2 }
  0xf8   : > { %v512_v7 = vpop.f32.mrf.mxu2  ;;  %v510_v31 = vadd.f32 %v509_v3, %v484_v28 }
  0xfd   : > { %v463_v8 = vpop.f32.mrf.mxu0 }
  0xff   : > { %v486_v10 = vpop.f32.mrf.mxu1 }
 0x100   : > { %v557_v9 = vpop.f32.mrf.mxu3  ;;  %v487_v41 = vadd.f32 %v486_v10, %v460_v4 }
 0x102   : > { %v515_v11 = vpop.f32.mrf.mxu2  ;;  %v513_v47 = vadd.f32 %v512_v7, %v487_v41 }
 0x108   : > { %v606_v12 = vpop.f32.mrf.mxu0 }
 0x10a   : > { %v560_v13 = vpop.f32.mrf.mxu3  ;;  %v489_v14 = vpop.f32.mrf.mxu1 }
 0x10b   : > { %v490_v57 = vadd.f32 %v489_v14, %v463_v8 }
 0x10c   : > { %v580_v15 = vpop.f32.mrf.mxu2 }
 0x10d   : > { %v581_v26 = vadd.f32 %v580_v15, %v554_v5  ;;  %v516_v1 = vadd.f32 %v515_v11, %v490_v57 }
 0x10f   : > { %v607_v29 = vadd.f32 %v606_v12, %v581_v26 }
 0x111   : > { %v615_v36 = vmax.f32 %v510_v31, %v607_v29 }
 0x112   : > { %v609_v16 = vpop.f32.mrf.mxu0 }
 0x115   : > { %v680_v18 = vpop.f32.mrf.mxu3 }
 0x116   : > { %v583_v19 = vpop.f32.mrf.mxu2 }
 0x117   : > { %v654_v17 = vpop.f32.mrf.mxu1  ;;  %v584_v35 = vadd.f32 %v583_v19, %v557_v9 }
 0x118   : > { %v681_v30 = vadd.f32 %v680_v18, %v654_v17 }
 0x119   : > { %v610_v44 = vadd.f32 %v609_v16, %v584_v35 }
 0x11b   : > { %v616_v53 = vmax.f32 %v513_v47, %v610_v44 }
 0x11c   : > { %v612_v20 = vpop.f32.mrf.mxu0 }
 0x11f   : > { %v586_v23 = vpop.f32.mrf.mxu2 }
 0x120   : > { %v683_v22 = vpop.f32.mrf.mxu3  ;;  %v587_v52 = vadd.f32 %v586_v23, %v560_v13 }
 0x121   : > { %v657_v21 = vpop.f32.mrf.mxu1  ;;  %v824_v38 = vpop.permute.xlu0 %823 }
 0x122   : > { %v684_v45 = vadd.f32 %v683_v22, %v657_v21  ;;  %v613_v62 = vadd.f32 %v612_v20, %v587_v52 }
 0x124   : > { %v617_v6 = vmax.f32 %v516_v1, %v613_v62 }
 0x125   : > { %v834_v13 = vpop.permute.xlu1 %833 }
 0x126   : > { %v706_v24 = vpop.f32.mrf.mxu0 }
 0x127   : > { %v707_v32 = vadd.f32 %v706_v24, %v681_v30 }
 0x129   : > { %v715_v42 = vmax.f32 %v615_v36, %v707_v32  ;;  %v829_v61 = vpop.permute.xlu0 %828 }
 0x12a   : > { %v660_v25 = vpop.f32.mrf.mxu1  ;;  %v686_v27 = vpop.f32.mrf.mxu3 }
 0x12b   : > { %v687_v63 = vadd.f32 %v686_v27, %v660_v25 }
 0x12e   : > { %v709_v39 = vpop.f32.mrf.mxu0 }
 0x12f   : > { %v710_v48 = vadd.f32 %v709_v39, %v684_v45 }
 0x131   : > { %v716_v58 = vmax.f32 %v616_v53, %v710_v48 }
 0x132   : > { %v754_v33 = vpop.f32.mrf.mxu2  ;;  %v780_v34 = vpop.f32.mrf.mxu1 }
 0x133   : > { %v781_v37 = vadd.f32 %v780_v34, %v754_v33 }
 0x134   : > { %v806_v40 = vpop.f32.mrf.mxu3 }
 0x135   : > { %v807_v43 = vadd.f32 %v806_v40, %v781_v37 }
 0x136   : > { %v712_v60 = vpop.f32.mrf.mxu0 }
 0x137   : > { %v815_v46 = vmax.f32 %v715_v42, %v807_v43  ;;  %v713_v2 = vadd.f32 %v712_v60, %v687_v63 }
 0x139   : > { %v836_v49 = vadd.f32 %v824_v38, %v815_v46  ;;  %v717_v10 = vmax.f32 %v617_v6, %v713_v2 }
 0x13a   : > { %v757_v50 = vpop.f32.mrf.mxu2  ;;  %v783_v51 = vpop.f32.mrf.mxu1 }
 0x13b   : > { %v839_v54 = vmax.f32 %v836_v49, 0.0  ;;  %v784_v55 = vadd.f32 %v783_v51, %v757_v50 }
 0x13c   : > { %v809_v56 = vpop.f32.mrf.mxu3 }
 0x13d   : > { %842 = vst [vmem:[%s1661_s7] sm:$0xff] %v839_v54  ;;  %v810_v59 = vadd.f32 %v809_v56, %v784_v55 }
 0x13f   : > { %v816_v0 = vmax.f32 %v716_v58, %v810_v59 }
 0x141   : > { %v837_v3 = vadd.f32 %v829_v61, %v816_v0 }
 0x142   : > { %v760_v4 = vpop.f32.mrf.mxu2  ;;  %v786_v5 = vpop.f32.mrf.mxu1 }
 0x143   : > { %v840_v7 = vmax.f32 %v837_v3, 0.0  ;;  %v787_v8 = vadd.f32 %v786_v5, %v760_v4 }
 0x144   : > { %v812_v9 = vpop.f32.mrf.mxu3  ;;  %v886_v11 = vld [vmem:[%s1661_s7] sm:$0xff] (%p1104_p5) }
 0x145   : > { %843 = vst [vmem:[%s1661_s7 + $0x8] sm:$0xff] %v840_v7  ;;  %v813_v12 = vadd.f32 %v812_v9, %v787_v8 }
 0x146   : > { %887 = vst [vmem:[%s853_s9] sm:$0xff] (%p1104_p5), %v886_v11 }
 0x147   : > { %v817_v14 = vmax.f32 %v717_v10, %v813_v12 }
 0x149   : > { %v838_v15 = vadd.f32 %v834_v13, %v817_v14  ;;  %851 = sbr.rel (!%p1104_p5) target bundleno = 342 (0x156), region = 74 }
 0x14b   : > { %v841_v16 = vmax.f32 %v838_v15, 0.0 }
 0x14c   : > { %v888_v17 = vld [vmem:[%s1661_s7 + $0x8] sm:$0xff] (%p1104_p5) }
 0x14d   : > { %844 = vst [vmem:[%s1661_s7 + $0x10] sm:$0xf] %v841_v16 }
 0x14e   : > { %889 = vst [vmem:[%s853_s9 + $0x10] sm:$0xff] %v888_v17 }
 0x154   : > { %v890_v18 = vld [vmem:[%s1661_s7 + $0x10] sm:$0xff] }
 0x155   : > { %891 = vst [vmem:[%s853_s9 + $0x20] sm:$0xff] %v890_v18 }
 0x156 PF: > { %p10_p10 = scmp.ge.s32.totalorder %s1091_s16, 4   ;;  %s1691_s12 = smov %s1047_s13 }
 0x157   : > { %s1692_s13 = smov %s1102_s19  ;;  %s1693_s14 = smov %s1091_s16 }
 0x158   :  { %12 = sbr.rel (!%p10_p10) target bundleno = 2 (0x2), region = 146 }

// kernel: mnist_net_forward.5
= control target key start
LH: loop header
LB: loop body
LE: loop exit
PB: predicated region body
PF: predicated region fallthrough
CT: control target
= control target key end

     0   :  { %10 = vsyncpa [#allocation3], 0  ;;  %s841_s0 = inlined_call_operand.vmem [shape: f32[16,320], index: 0, kind: input, shape index: {}]   ;;  %s842_s1 = inlined_call_operand.vmem [shape: f32[320,50], index: 1, kind: input, shape index: {}]   ;;  %s843_s2 = inlined_call_operand.vmem [shape: f32[1,50], index: 2, kind: input, shape index: {}]   ;;  %s844_s3 = inlined_call_operand.vmem [shape: f32[50,128], index: 3, kind: input, shape index: {}]   ;;  %s845_s4 = inlined_call_operand.vmem [shape: f32[1,128], index: 4, kind: input, shape index: {}]   ;;  %s846_s5 = inlined_call_operand.hbm [shape: f32[16,128], index: 5, kind: output, shape index: {}]  }
   0x1   :  { %12 = vsyncpa [#allocation3 + $0x1], 0  ;;  %s599_s18 = smov 0   ;;  %s601_s19 = smov 0  }
   0x2   :  { %s603_s20 = smov 0   ;;  %s605_s21 = smov 0  }
   0x3 LB: > { %s620_s22 = sadd.s32 4294967295, %s567_s21   ;;  %s450_s23 = sadd.s32 4294967294, %s567_s21   ;;  %s567_s21 = sphi %s605_s21, %s852_s21   ;;  %s563_s20 = sphi %s603_s20, %s851_s20   ;;  %s559_s19 = sphi %s601_s19, %s850_s19   ;;  %s555_s18 = sphi %s599_s18, %s849_s18  }
   0x4   : > { %s624_s24 = sadd.s32 1, %s567_s21   ;;  %s135_s25 = sadd.s32 1, %s563_s20 }
   0x5   : > { %s132_s26 = ssub.s32 %s567_s21, %s624_s24  ;;  %p145_p0 = scmp.ne.s32.totalorder %s563_s20, %s559_s19 }
   0x6   : > { %p133_p1 = scmp.eq.s32.totalorder %s132_s26, 0  ;;  %p146_p2 = scmp.eq.s32.totalorder %s620_s22, 1 }
   0x7   : > { %p151_p3 = scmp.ne.s32.totalorder %s559_s19, %s555_s18  ;;  %p152_p4 = scmp.eq.s32.totalorder %s450_s23, 1 }
   0x8   : > { %s635_s27 = scalar_select %p133_p1, %s563_s20, %s135_s25  }
   0x9   : > { %p637_p5 = por %p146_p2, %p145_p0  ;;  %p641_p6 = por %p152_p4, %p151_p3 }
   0xa   : > { %p453_p7 = scmp.ge.s32.totalorder %s567_s21, 1  ;;  %p190_p8 = scmp.lt.s32.totalorder %s567_s21, 3 }
   0xc   : > { %p191_p9 = pnand %p453_p7, %p190_p8 }
   0xd   : > { %p218_p10 = scmp.lt.s32.totalorder (!%p191_p9), %s620_s22, 1  ;;  %s215_s11 = sand.u32 (!%p191_p9), 1, %s559_s19  }
   0xe   : > { %194 = sbr.rel (%p191_p9) target bundleno = 322 (0x142), region = 40  ;;  %s454_s12 = sshll.u32 (!%p191_p9), %s215_s11, 3 }
   0xf   : > { %s460_s13 = sshll.u32 (!%p191_p9), %s620_s22, 3  ;;  %s217_s6 = scalar_lea.vmem (!%p191_p9), [#allocation2], %s454_s12 }
  0x10   : > { %s386_s17 = scalar_lea.hbm (!%p191_p9), %s846_s5, %s460_s13  ;;  %s388_s7 = sshll.u32 (!%p191_p9), %s217_s6, 4  ;;  %s389_s7 = int_to_ptr.vmem [resolvable:$true] %s388_s7 }
  0x11   : > { %s376_s8 = scalar_lea.sflag (!%p191_p9), [#allocation3], %s215_s11 }
  0x13   : > { %v241_v0 = vld [vmem:[%s842_s1 + $0x78] sm:$0xff]  ;;  %v240_v1 = vld [vmem:[%s842_s1 + $0x70] sm:$0xff]  ;;  %v239_v4 = vld [vmem:[%s842_s1 + $0x68] sm:$0xff]  ;;  %s696_s25 = scalar_select %p218_p10, %s620_s22, 1  ;;  %vm350_vm0 = vcmask 1041408   ;;  %vm270_vm1 = vcmask 523264  }
  0x14   : > { %v257_v2 = vld [vmem:[%s842_s1 + $0xf8] sm:$0xff]  ;;  %274 = vmatpush.msra.mxu0 %v241_v0  ;;  %v256_v3 = vld [vmem:[%s842_s1 + $0xf0] sm:$0xff]  ;;  %v255_v5 = vld [vmem:[%s842_s1 + $0xe8] sm:$0xff]  ;;  %vm346_vm2 = vcmask 408576  }
  0x15   : > { %294 = vmatpush.msra.mxu1 %v257_v2  ;;  %v238_v6 = vld [vmem:[%s842_s1 + $0x60] sm:$0xff]  ;;  %v265_v8 = vld [vmem:[%s842_s1 + $0x138] sm:$0xff]  ;;  %v264_v11 = vld [vmem:[%s842_s1 + $0x130] sm:$0xff]  ;;  %s463_s16 = smul.u32 24, %s696_s25 }
  0x16   : > { %275 = vmatpush.msra.mxu0 %v240_v1  ;;  %v254_v7 = vld [vmem:[%s842_s1 + $0xe0] sm:$0xff]  ;;  %v237_v9 = vld [vmem:[%s842_s1 + $0x58] sm:$0xff]  ;;  %322 = vmatpush.msra.mxu2 %v265_v8  ;;  %v263_v12 = vld [vmem:[%s842_s1 + $0x128] sm:$0xff] }
  0x17   : > { %295 = vmatpush.msra.mxu1 %v256_v3  ;;  %v253_v10 = vld [vmem:[%s842_s1 + $0xd8] sm:$0xff]  ;;  %v236_v13 = vld [vmem:[%s842_s1 + $0x50] sm:$0xff]  ;;  %v262_v15 = vld [vmem:[%s842_s1 + $0x120] sm:$0xff]  ;;  %s744_s30 = scalar_lea.vmem %s841_s0, %s463_s16  ;;  %s525_s16 = scalar_lea.hbm %s846_s5, 16 }
  0x18   : > { %276 = vmatpush.msra.mxu0 %v239_v4  ;;  %v252_v14 = vld [vmem:[%s842_s1 + $0xd0] sm:$0xff]  ;;  %323 = vmatpush.msra.mxu2 %v264_v11  ;;  %v235_v16 = vld [vmem:[%s842_s1 + $0x48] sm:$0xff]  ;;  %v261_v18 = vld [vmem:[%s842_s1 + $0x118] sm:$0xff] }
  0x19   : > { %296 = vmatpush.msra.mxu1 %v255_v5  ;;  %v251_v17 = vld [vmem:[%s842_s1 + $0xc8] sm:$0xff]  ;;  %v234_v19 = vld [vmem:[%s842_s1 + $0x40] sm:$0xff]  ;;  %v233_v21 = vld [vmem:[%s842_s1 + $0x38] sm:$0xff] }
  0x1a   : > { %277 = vmatpush.msra.mxu0 %v238_v6  ;;  %324 = vmatpush.msra.mxu2 %v263_v12  ;;  %v250_v20 = vld [vmem:[%s842_s1 + $0xc0] sm:$0xff]  ;;  %v260_v22 = vld [vmem:[%s842_s1 + $0x110] sm:$0xff]  ;;  %v249_v23 = vld [vmem:[%s842_s1 + $0xb8] sm:$0xff] }
  0x1b   : > { %297 = vmatpush.msra.mxu1 %v254_v7  ;;  %v259_v24 = vld [vmem:[%s842_s1 + $0x108] sm:$0xff]  ;;  %v341_v25 = vld [vmem:[%s844_s3 + $0x30] sm:$0x3]  ;;  %v258_v29 = vld [vmem:[%s842_s1 + $0x100] sm:$0xff] }
  0x1c   : > { %278 = vmatpush.msra.mxu0 %v237_v9  ;;  %325 = vmatpush.msra.mxu2 %v262_v15  ;;  %v340_v26 = vld [vmem:[%s844_s3 + $0x28] sm:$0xff]  ;;  %v232_v27 = vld [vmem:[%s842_s1 + $0x30] sm:$0xff]  ;;  %v230_v33 = vld [vmem:[%s842_s1 + $0x20] sm:$0xff] }
  0x1d   : > { %298 = vmatpush.msra.mxu1 %v253_v10  ;;  %v248_v28 = vld [vmem:[%s842_s1 + $0xb0] sm:$0xff]  ;;  %457 = vmatpush.msk.msra.mxu3 %vm350_vm0, %v341_v25  ;;  %v231_v30 = vld [vmem:[%s842_s1 + $0x28] sm:$0xff]  ;;  %v246_v34 = vld [vmem:[%s842_s1 + $0xa0] sm:$0xff] }
  0x1e   : > { %279 = vmatpush.msra.mxu0 %v236_v13  ;;  %326 = vmatpush.msra.mxu2 %v261_v18  ;;  %v247_v31 = vld [vmem:[%s842_s1 + $0xa8] sm:$0xff]  ;;  %v225_v32 = vld [vmem:[%s744_s30 + $0x10] sm:$0xff]  ;;  %v229_v35 = vld [vmem:[%s842_s1 + $0x18] sm:$0xff] }
  0x1f   : > { %299 = vmatpush.msra.mxu1 %v252_v14  ;;  %364 = vmatpush.msra.mxu3 %v340_v26  ;;  %v245_v36 = vld [vmem:[%s842_s1 + $0x98] sm:$0xff]  ;;  %v228_v37 = vld [vmem:[%s842_s1 + $0x10] sm:$0xff]  ;;  %v227_v39 = vld [vmem:[%s842_s1 + $0x8] sm:$0xff] }
  0x20   : > { %280 = vmatpush.msra.mxu0 %v235_v16  ;;  %327 = vmatpush.msra.mxu2 %v260_v22  ;;  %v244_v38 = vld [vmem:[%s842_s1 + $0x90] sm:$0xff]  ;;  %v243_v40 = vld [vmem:[%s842_s1 + $0x88] sm:$0xff]  ;;  %v226_v41 = vld [vmem:[%s842_s1] sm:$0xff] }
  0x21   : > { %300 = vmatpush.msra.mxu1 %v251_v17  ;;  %v242_v42 = vld [vmem:[%s842_s1 + $0x80] sm:$0xff]  ;;  %v224_v44 = vld [vmem:[%s744_s30 + $0x8] sm:$0xff]  ;;  %v338_v46 = vld [vmem:[%s844_s3 + $0x18] sm:$0xff] }
  0x22   : > { %281 = vmatpush.msra.mxu0 %v234_v19  ;;  %328 = vmatpush.msra.mxu2 %v259_v24  ;;  %v223_v43 = vld [vmem:[%s744_s30] sm:$0xff]  ;;  %v337_v47 = vld [vmem:[%s844_s3 + $0x10] sm:$0xff]  ;;  %v336_v48 = vld [vmem:[%s844_s3 + $0x8] sm:$0xff]  ;;  %s390_s30 = sshll.u32 %s386_s17, 4  ;;  %s391_s30 = int_to_ptr.hbm [resolvable:$true] %s390_s30 }
  0x23   : > { %301 = vmatpush.msra.mxu1 %v250_v20  ;;  %v339_v45 = vld [vmem:[%s844_s3 + $0x20] sm:$0xff]  ;;  %s519_s9 = sshra.s32 %s391_s30, 4  ;;  %s520_s9 = int_to_ptr.hbm [resolvable:$true] %s519_s9 }
  0x24   : > { %282 = vmatpush.msra.mxu0 %v233_v21  ;;  %329 = vmatpush.msra.mxu2 %v258_v29  ;;  %v335_v49 = vld [vmem:[%s844_s3] sm:$0xff]  ;;  %s521_s22 = scalar_lea.hbm %s520_s9, 8  ;;  %p526_p0 = scmp.lt.s32.totalorder %s520_s9, %s846_s5 }
  0x25   : > { %302 = vmatpush.msra.mxu1 %v249_v23  ;;  %456 = vmatmul.msk.f32.vlgmr.msra.gmra.mxu2 %vm270_vm1, %v225_v32  ;;  %v503_v50 = vld [vmem:[%s843_s2] ss:$0 sm:$0xff]  ;;  %p522_p11 = scmp.ne.s32.totalorder %s520_s9, %s521_s22  ;;  %p527_p1 = scmp.lt.s32.totalorder %s525_s16, %s521_s22 }
  0x26   : > { %283 = vmatpush.msra.mxu0 %v232_v27  ;;  %365 = vmatpush.msra.mxu3 %v339_v45  ;;  %v504_v58 = vld [vmem:[%s845_s4] ss:$0 sm:$0xff] }
  0x27   : > { %303 = vmatpush.msra.mxu1 %v248_v28  ;;  %p523_p12 = pnand %p522_p11, %p637_p5  ;;  %p528_p2 = por %p527_p1, %p526_p0 }
  0x28   : > { %284 = vmatpush.msra.mxu0 %v231_v30  ;;  %366 = vmatpush.msra.mxu3 %v338_v46 }
  0x29   : > { %304 = vmatpush.msra.mxu1 %v247_v31  ;;  %p524_p13 = pneg %p523_p12 }
  0x2a   : > { %285 = vmatpush.msra.mxu0 %v230_v33  ;;  %367 = vmatpush.msra.mxu3 %v337_v47 }
  0x2b   : > { %305 = vmatpush.msra.mxu1 %v246_v34  ;;  %p529_p3 = pnand %p528_p2, %p524_p13 }
  0x2c   : > { %286 = vmatpush.msra.mxu0 %v229_v35  ;;  %368 = vmatpush.msra.mxu3 %v336_v48 }
  0x2d   : > { %306 = vmatpush.msra.mxu1 %v245_v36 }
  0x2e   : > { %287 = vmatpush.msra.mxu0 %v228_v37  ;;  %369 = vmatpush.msra.mxu3 %v335_v49 }
  0x2f   : > { %307 = vmatpush.msra.mxu1 %v244_v38 }
  0x30   : > { %288 = vmatpush.msra.mxu0 %v227_v39 }
  0x31   : > { %308 = vmatpush.msra.mxu1 %v243_v40 }
  0x32   : > { %289 = vmatpush.msra.mxu0 %v226_v41 }
  0x33   : > { %309 = vmatpush.msra.mxu1 %v242_v42  ;;  %290 = vmatmul.f32.vlgmr.msra.gmra.mxu0 %v223_v43 }
  0x34   : > { %310 = vmatmul.f32.vlgmr.msra.gmra.mxu1 %v224_v44 }
  0xa8   : > { %v331_v54 = vpop.f32.mrf.mxu2 }
  0xb0   : > { %v291_v51 = vpop.f32.mrf.mxu0 }
  0xb1   : > { %v311_v52 = vpop.f32.mrf.mxu1  ;;  %v292_v53 = vadd.f32 %v503_v50, %v291_v51 }
  0xb3   : > { %v312_v55 = vadd.f32 %v311_v52, %v292_v53 }
  0xb5   : > { %v332_v56 = vadd.f32 %v331_v54, %v312_v55 }
  0xb7   : > { %v334_v57 = vmax.f32 %v332_v56, 0.0 }
  0xb9   : > { %458 = vmatmul.msk.f32.vlgmr.msra.gmra.mxu3 %vm346_vm2, %v334_v57 }
 0x13c   : > { %v371_v59 = vpop.f32.mrf.mxu3 }
 0x13d   : > { %v372_v60 = vadd.f32 %v504_v58, %v371_v59 }
 0x13f   : > { %374 = vst [vmem:[%s217_s6] sm:$0xff] %v372_v60 }
 0x140   : > { %532 = shalt.err (!%p529_p3)
}
 0x141   : > { %464 = dma.vmem_to_hbm [thread:$0]  (%p637_p5), %s389_s7, 128, %s391_s30, %s376_s8  }
 0x142 PF: > { %p470_p4 = scmp.ge.s32.totalorder %s567_s21, 2  ;;  %s402_s11 = sand.u32 1, %s555_s18  }
 0x143   : > { %s403_s14 = scalar_lea.sflag [#allocation3], %s402_s11 }
 0x144   : > { %p467_p7 = pnand %p470_p4, %p641_p6 }
 0x146   : > { %p468_p8 = pneg %p467_p7 }
 0x148   : > { %550 = dma.done.wait (%p468_p8), %s403_s14, 128  }
 0x149   : > { %552 = vsyncadd (%p468_p8), %s403_s14, 4294967168  ;;  %p15_p9 = scmp.ge.s32.totalorder %s624_s24, 4   ;;  %s849_s18 = smov %s559_s19 }
 0x14a   : > { %s850_s19 = smov %s563_s20  ;;  %s851_s20 = smov %s635_s27 }
 0x14b   : > { %s852_s21 = smov %s624_s24  ;;  %17 = sbr.rel (!%p15_p9) target bundleno = 3 (0x3), region = 75 }
 0x150   :  { %409 = vsyncpa [#allocation3], 1 }
 0x151   :  { %411 = vsyncpa [#allocation3 + $0x1], 1 }

</bundles_post_ra>
